<compile_context>
chip_gen: v6e
topology: v6e:2x2x1
jax: 0.10.0
libtpu: 0.0.40
codegen_flags: <defaults>
</compile_context>

<pallas_src>
import numpy as np
import jax
import jax.numpy as jnp
from jax.experimental import pallas as pl
from jax.experimental.pallas import tpu as pltpu


def _round_up(n, m):
    return (n + m - 1) // m * m


def _prober_kernel(x_ref, ws_ref, w1_ref, b1_ref, w2_ref, b2_ref, out_ref):
    """One batch tile: rank-1 layer aggregation + 2-layer MLP (per-l epilogue).

    x_ref : (L, Bt, H)     activations, layer-major (T=1 squeezed in wrapper)
    ws_ref: (1, L)         softmax(aggregator) in SMEM (scalar reads)
    w1_ref: (H, HID)       b1_ref: (1, HID)   f32 bias
    w2_ref: (HID, OUTP)    b2_ref: (1, OUTP)  f32 bias (padded to 128 lanes)
    out_ref: (L*Bt, OUTP)  row r = l*Bt + b  ->  output[b, l, :]
    """
    L, Bt, _ = x_ref.shape

    # Rank-1 aggregation in t for T==1: agg[b, t, :] = w_soft[t] * sum_l x[b, l, :].
    # Leading-axis sum = 11 full-width VALU adds over (Bt, H) vregs (no XLU).
    xsum = jnp.sum(x_ref[...].astype(jnp.float32), axis=0)             # (Bt, H)

    # Shared hidden_0 matmul on the unscaled row sums: M = Bt rows, not Bt*L.
    z = jnp.dot(xsum.astype(w1_ref.dtype), w1_ref[...],
                preferred_element_type=jnp.float32)                    # (Bt, HID)

    b1 = b1_ref[...]                                                   # (1, HID)
    b2 = b2_ref[...]                                                   # (1, OUTP)
    w2 = w2_ref[...]                                                   # (HID, OUTP)

    # Fused per-layer epilogue (L=12, statically unrolled): scalar scale (VPU)
    # + bias + ReLU + output matmul, stored directly to the output rows.  The
    # live intermediate stays (Bt, HID) instead of (L*Bt, HID).
    for l in range(L):
        h = jnp.maximum(ws_ref[0, l] * z + b1, 0.0)                    # (Bt, HID)
        o = jnp.dot(h.astype(w2.dtype), w2,
                    preferred_element_type=jnp.float32) + b2           # (Bt, OUTP)
        out_ref[pl.ds(l * Bt, Bt), :] = o.astype(out_ref.dtype)


def mlp_prober_forward(x, params, *, block_b=256, weight_dtype=jnp.bfloat16):
    """x: (B, L, T, H) with T==1 (chunk axis).  Returns (B, L, num_outputs) f32.

    Pass weight_dtype=jnp.float32 for the bit-exact (reference) mode.
    """
    B, L, T, H = x.shape
    agg = params["aggregator"]                      # (1, L, 1)
    w1, b1 = params["w1"], params["b1"]             # (H, HID), (1, HID)
    w2, b2 = params["w2"], params["b2"]             # (HID, OUT), (1, OUT)
    HID = w1.shape[1]
    OUT = w2.shape[1]
    OUTP = _round_up(OUT, 128)                      # lane-dense output stores

    if T != 1:
        # TODO(synk): T==L chunked inputs need the general (non rank-1) aggregation path.
        raise NotImplementedError("fused Pallas path implemented for T==1 only")

    # Aggregator softmax (12-element constant) hoisted out of the kernel; it
    # lives in SMEM so the kernel does cheap scalar reads.
    w_soft = jax.nn.softmax(agg[0, :, 0].astype(jnp.float32)).reshape(1, L)

    # ---- batch tiling -----------------------------------------------------
    assert block_b % 8 == 0
    B8 = _round_up(B, 8)
    Bt = min(block_b, B8)
    if Bt == B8 and B8 >= 256:
        # big batch in a single tile: split so nB >= 2 and both v7x
        # TensorCores get work via the ("parallel",) grid axis.
        Bt = _round_up(pl.cdiv(B8, 2), 8)
    B_pad = _round_up(B8, Bt)
    nB = B_pad // Bt

    # layer-major layout (L, B_pad, H): trailing (Bt, H) tile is (8,128)-aligned
    # (no 12->16 sublane pad) and the L reduction is pure VALU adds.
    x3 = jnp.transpose(x[:, :, 0, :], (1, 0, 2))                 # (L, B, H)
    x3 = jnp.pad(x3, ((0, 0), (0, B_pad - B), (0, 0)))

    # lane-dense output layer: zero-pad the OUT-wide weights/bias to 128 lanes.
    w2p = jnp.pad(w2, ((0, 0), (0, OUTP - OUT)))
    b2p = jnp.pad(b2, ((0, 0), (0, OUTP - OUT))).astype(jnp.float32)
    b1f = b1.astype(jnp.float32)

    # bf16 weights by default: full-rate MXU + halved weight DMA; biases stay f32.
    w1c = w1.astype(weight_dtype)
    w2c = w2p.astype(weight_dtype)

    flops = 2 * B_pad * H * HID + 2 * B_pad * L * HID * OUTP
    bytes_accessed = (x3.size * 4 + nB * L * Bt * OUTP * 4
                      + w1c.size * w1c.dtype.itemsize
                      + w2c.size * w2c.dtype.itemsize
                      + (HID + OUTP + L) * 4)

    out2 = pl.pallas_call(
        _prober_kernel,
        out_shape=jax.ShapeDtypeStruct((nB * L * Bt, OUTP), jnp.float32),
        grid_spec=pltpu.PrefetchScalarGridSpec(
            num_scalar_prefetch=0,
            grid=(nB,),
            in_specs=[
                pl.BlockSpec((L, Bt, H), lambda i: (0, i, 0)),
                # 12-element softmax weights: whole array in SMEM
                pl.BlockSpec(memory_space=pltpu.MemorySpace.SMEM),
                # constant-index blocks: fetched once, reused across the grid
                pl.BlockSpec((H, HID), lambda i: (0, 0)),
                pl.BlockSpec((1, HID), lambda i: (0, 0)),
                pl.BlockSpec((HID, OUTP), lambda i: (0, 0)),
                pl.BlockSpec((1, OUTP), lambda i: (0, 0)),
            ],
            out_specs=pl.BlockSpec((L * Bt, OUTP), lambda i: (i, 0)),
        ),
        compiler_params=pltpu.CompilerParams(
            dimension_semantics=("parallel",)),
        cost_estimate=pl.CostEstimate(
            flops=flops, transcendentals=0, bytes_accessed=bytes_accessed),
    )(x3, w_soft, w1c, b1f, w2c, b2p)

    # rows are ordered (tile, l, b) -> unscramble to (B, L, OUT) and strip
    # batch / lane padding (layout plumbing, outside the kernel).
    out = out2.reshape(nB, L, Bt, OUTP).transpose(0, 2, 1, 3)
    return out.reshape(B_pad, L, OUTP)[:B, :, :OUT]


def reference_forward(x, params):
    """Pure-JAX reference mirroring the PyTorch forward (layer='all')."""
    w = jax.nn.softmax(params["aggregator"], axis=1)     # (1, L, 1)
    xs = (x * w).sum(axis=1)                             # torch right-aligned broadcast
    h = jnp.maximum(xs @ params["w1"] + params["b1"][0], 0.0)
    return h @ params["w2"] + params["b2"][0]


if __name__ == "__main__":
    # Shapes consistent with the module: hidden=512, num_outputs=87 (fixed in
    # the module), L=12 transformer layers, T=1 chunk, feature dim 128.
    B, L, T, H = 2, 12, 1, 128
    HID, OUT = 512, 87

    key = jax.random.PRNGKey(0)
    kx, ka, k1, k2, k3, k4 = jax.random.split(key, 6)

    x = jax.random.normal(kx, (B, L, T, H), dtype=jnp.float32)
    params = {
        "aggregator": jax.random.normal(ka, (1, L, 1), dtype=jnp.float32),
        "w1": jax.random.normal(k1, (H, HID), dtype=jnp.float32) / np.sqrt(H),
        "b1": jax.random.normal(k2, (1, HID), dtype=jnp.float32) * 0.01,
        "w2": jax.random.normal(k3, (HID, OUT), dtype=jnp.float32) / np.sqrt(HID),
        "b2": jax.random.normal(k4, (1, OUT), dtype=jnp.float32) * 0.01,
    }

    ref = reference_forward(x, params)

    # f32 reference mode: exact numerics check against the torch-equivalent ref.
    out_f32 = jax.block_until_ready(
        mlp_prober_forward(x, params, weight_dtype=jnp.float32))
    assert out_f32.shape == (B, L, OUT), out_f32.shape
    np.testing.assert_allclose(np.asarray(out_f32), np.asarray(ref),
                               rtol=1e-3, atol=1e-4)

    # Default fast path: bf16 MXU operands, f32 accumulation.
    out_bf16 = jax.block_until_ready(mlp_prober_forward(x, params))
    assert out_bf16.shape == (B, L, OUT), out_bf16.shape
    np.testing.assert_allclose(np.asarray(out_bf16), np.asarray(ref),
                               rtol=5e-2, atol=1.5e-1)

    print("KERNEL_OK")
</pallas_src>

<mosaic_0001>
module attributes {stable_mosaic.version = 11 : i64} {
  func.func @_prober_kernel(%arg0: i32, %arg1: memref<12x8x128xf32, #tpu.memory_space<vmem>>, %arg2: memref<1x12xf32, #tpu.memory_space<smem>>, %arg3: memref<128x512xf32, #tpu.memory_space<vmem>>, %arg4: memref<1x512xf32, #tpu.memory_space<vmem>>, %arg5: memref<512x128xf32, #tpu.memory_space<vmem>>, %arg6: memref<1x128xf32, #tpu.memory_space<vmem>>, %arg7: memref<96x128xf32, #tpu.memory_space<vmem>>) attributes {dimension_semantics = [#tpu.dimension_semantics<parallel>], iteration_bounds = array<i64: 1>, scalar_prefetch = 0 : i64, scratch_operands = 0 : i64, tpu.core_type = #tpu.core_type<tc>, window_params = [{transform_indices = @transform_0, window_bounds = array<i64: 12, 8, 128>}, {transform_indices = @transform_1, window_bounds = array<i64: 1, 12>}, {pipeline_mode = #tpu.pipeline_mode<synchronous>, transform_indices = @transform_2, window_bounds = array<i64: 128, 512>}, {pipeline_mode = #tpu.pipeline_mode<synchronous>, transform_indices = @transform_3, window_bounds = array<i64: 1, 512>}, {pipeline_mode = #tpu.pipeline_mode<synchronous>, transform_indices = @transform_4, window_bounds = array<i64: 512, 128>}, {pipeline_mode = #tpu.pipeline_mode<synchronous>, transform_indices = @transform_5, window_bounds = array<i64: 1, 128>}, {transform_indices = @transform_6, window_bounds = array<i64: 96, 128>}]} {
    %c0 = arith.constant 0 : index
    %c0_0 = arith.constant 0 : index
    %c0_1 = arith.constant 0 : index
    %0 = vector.load %arg1[%c0, %c0_0, %c0_1] : memref<12x8x128xf32, #tpu.memory_space<vmem>>, vector<12x8x128xf32>
    %cst = arith.constant dense<0.000000e+00> : vector<8x128xf32>
    %1 = vector.multi_reduction <add>, %0, %cst [0] : vector<12x8x128xf32> to vector<8x128xf32>
    %c0_2 = arith.constant 0 : index
    %c0_3 = arith.constant 0 : index
    %2 = vector.load %arg3[%c0_2, %c0_3] : memref<128x512xf32, #tpu.memory_space<vmem>>, vector<128x512xf32>
    %cst_4 = arith.constant dense<0.000000e+00> : vector<8x512xf32>
    %3 = tpu.matmul %1, %2, %cst_4 {dimension_numbers = #tpu.dot_dimension_numbers<[1], [0], [0], [1], [0, 0, 1, 1], [], []>} : vector<8x128xf32>, vector<128x512xf32>, vector<8x512xf32> -> vector<8x512xf32>
    %c0_5 = arith.constant 0 : index
    %c0_6 = arith.constant 0 : index
    %4 = vector.load %arg4[%c0_5, %c0_6] : memref<1x512xf32, #tpu.memory_space<vmem>>, vector<1x512xf32>
    %c0_7 = arith.constant 0 : index
    %c0_8 = arith.constant 0 : index
    %5 = vector.load %arg6[%c0_7, %c0_8] : memref<1x128xf32, #tpu.memory_space<vmem>>, vector<1x128xf32>
    %c0_9 = arith.constant 0 : index
    %c0_10 = arith.constant 0 : index
    %6 = vector.load %arg5[%c0_9, %c0_10] : memref<512x128xf32, #tpu.memory_space<vmem>>, vector<512x128xf32>
    %c0_11 = arith.constant 0 : index
    %c0_12 = arith.constant 0 : index
    %7 = memref.load %arg2[%c0_11, %c0_12] : memref<1x12xf32, #tpu.memory_space<smem>>
    %8 = vector.broadcast %7 : f32 to vector<8x512xf32>
    %9 = arith.mulf %8, %3 : vector<8x512xf32>
    %10 = vector.broadcast %4 : vector<1x512xf32> to vector<8x512xf32>
    %11 = arith.addf %9, %10 : vector<8x512xf32>
    %cst_13 = arith.constant 0.000000e+00 : f32
    %12 = vector.broadcast %cst_13 : f32 to vector<8x512xf32>
    %13 = arith.maximumf %11, %12 : vector<8x512xf32>
    %cst_14 = arith.constant dense<0.000000e+00> : vector<8x128xf32>
    %14 = tpu.matmul %13, %6, %cst_14 {dimension_numbers = #tpu.dot_dimension_numbers<[1], [0], [0], [1], [0, 0, 1, 1], [], []>} : vector<8x512xf32>, vector<512x128xf32>, vector<8x128xf32> -> vector<8x128xf32>
    %15 = vector.broadcast %5 : vector<1x128xf32> to vector<8x128xf32>
    %16 = arith.addf %14, %15 : vector<8x128xf32>
    %c0_15 = arith.constant 0 : index
    %c0_16 = arith.constant 0 : index
    %17 = vector.load %arg7[%c0_15, %c0_16] : memref<96x128xf32, #tpu.memory_space<vmem>>, vector<8x128xf32>
    tpu.vector_store %arg7[%c0_15, %c0_16], %16 {strides = array<i32>} : memref<96x128xf32, #tpu.memory_space<vmem>>, vector<8x128xf32>,
    %c0_17 = arith.constant 0 : index
    %c1 = arith.constant 1 : index
    %18 = memref.load %arg2[%c0_17, %c1] : memref<1x12xf32, #tpu.memory_space<smem>>
    %19 = vector.broadcast %18 : f32 to vector<8x512xf32>
    %20 = arith.mulf %19, %3 : vector<8x512xf32>
    %21 = vector.broadcast %4 : vector<1x512xf32> to vector<8x512xf32>
    %22 = arith.addf %20, %21 : vector<8x512xf32>
    %cst_18 = arith.constant 0.000000e+00 : f32
    %23 = vector.broadcast %cst_18 : f32 to vector<8x512xf32>
    %24 = arith.maximumf %22, %23 : vector<8x512xf32>
    %cst_19 = arith.constant dense<0.000000e+00> : vector<8x128xf32>
    %25 = tpu.matmul %24, %6, %cst_19 {dimension_numbers = #tpu.dot_dimension_numbers<[1], [0], [0], [1], [0, 0, 1, 1], [], []>} : vector<8x512xf32>, vector<512x128xf32>, vector<8x128xf32> -> vector<8x128xf32>
    %26 = vector.broadcast %5 : vector<1x128xf32> to vector<8x128xf32>
    %27 = arith.addf %25, %26 : vector<8x128xf32>
    %c8 = arith.constant 8 : index
    %c0_20 = arith.constant 0 : index
    %28 = vector.load %arg7[%c8, %c0_20] : memref<96x128xf32, #tpu.memory_space<vmem>>, vector<8x128xf32>
    tpu.vector_store %arg7[%c8, %c0_20], %27 {strides = array<i32>} : memref<96x128xf32, #tpu.memory_space<vmem>>, vector<8x128xf32>,
    %c0_21 = arith.constant 0 : index
    %c2 = arith.constant 2 : index
    %29 = memref.load %arg2[%c0_21, %c2] : memref<1x12xf32, #tpu.memory_space<smem>>
    %30 = vector.broadcast %29 : f32 to vector<8x512xf32>
    %31 = arith.mulf %30, %3 : vector<8x512xf32>
    %32 = vector.broadcast %4 : vector<1x512xf32> to vector<8x512xf32>
    %33 = arith.addf %31, %32 : vector<8x512xf32>
    %cst_22 = arith.constant 0.000000e+00 : f32
    %34 = vector.broadcast %cst_22 : f32 to vector<8x512xf32>
    %35 = arith.maximumf %33, %34 : vector<8x512xf32>
    %cst_23 = arith.constant dense<0.000000e+00> : vector<8x128xf32>
    %36 = tpu.matmul %35, %6, %cst_23 {dimension_numbers = #tpu.dot_dimension_numbers<[1], [0], [0], [1], [0, 0, 1, 1], [], []>} : vector<8x512xf32>, vector<512x128xf32>, vector<8x128xf32> -> vector<8x128xf32>
    %37 = vector.broadcast %5 : vector<1x128xf32> to vector<8x128xf32>
    %38 = arith.addf %36, %37 : vector<8x128xf32>
    %c16 = arith.constant 16 : index
    %c0_24 = arith.constant 0 : index
    %39 = vector.load %arg7[%c16, %c0_24] : memref<96x128xf32, #tpu.memory_space<vmem>>, vector<8x128xf32>
    tpu.vector_store %arg7[%c16, %c0_24], %38 {strides = array<i32>} : memref<96x128xf32, #tpu.memory_space<vmem>>, vector<8x128xf32>,
    %c0_25 = arith.constant 0 : index
    %c3 = arith.constant 3 : index
    %40 = memref.load %arg2[%c0_25, %c3] : memref<1x12xf32, #tpu.memory_space<smem>>
    %41 = vector.broadcast %40 : f32 to vector<8x512xf32>
    %42 = arith.mulf %41, %3 : vector<8x512xf32>
    %43 = vector.broadcast %4 : vector<1x512xf32> to vector<8x512xf32>
    %44 = arith.addf %42, %43 : vector<8x512xf32>
    %cst_26 = arith.constant 0.000000e+00 : f32
    %45 = vector.broadcast %cst_26 : f32 to vector<8x512xf32>
    %46 = arith.maximumf %44, %45 : vector<8x512xf32>
    %cst_27 = arith.constant dense<0.000000e+00> : vector<8x128xf32>
    %47 = tpu.matmul %46, %6, %cst_27 {dimension_numbers = #tpu.dot_dimension_numbers<[1], [0], [0], [1], [0, 0, 1, 1], [], []>} : vector<8x512xf32>, vector<512x128xf32>, vector<8x128xf32> -> vector<8x128xf32>
    %48 = vector.broadcast %5 : vector<1x128xf32> to vector<8x128xf32>
    %49 = arith.addf %47, %48 : vector<8x128xf32>
    %c24 = arith.constant 24 : index
    %c0_28 = arith.constant 0 : index
    %50 = vector.load %arg7[%c24, %c0_28] : memref<96x128xf32, #tpu.memory_space<vmem>>, vector<8x128xf32>
    tpu.vector_store %arg7[%c24, %c0_28], %49 {strides = array<i32>} : memref<96x128xf32, #tpu.memory_space<vmem>>, vector<8x128xf32>,
    %c0_29 = arith.constant 0 : index
    %c4 = arith.constant 4 : index
    %51 = memref.load %arg2[%c0_29, %c4] : memref<1x12xf32, #tpu.memory_space<smem>>
    %52 = vector.broadcast %51 : f32 to vector<8x512xf32>
    %53 = arith.mulf %52, %3 : vector<8x512xf32>
    %54 = vector.broadcast %4 : vector<1x512xf32> to vector<8x512xf32>
    %55 = arith.addf %53, %54 : vector<8x512xf32>
    %cst_30 = arith.constant 0.000000e+00 : f32
    %56 = vector.broadcast %cst_30 : f32 to vector<8x512xf32>
    %57 = arith.maximumf %55, %56 : vector<8x512xf32>
    %cst_31 = arith.constant dense<0.000000e+00> : vector<8x128xf32>
    %58 = tpu.matmul %57, %6, %cst_31 {dimension_numbers = #tpu.dot_dimension_numbers<[1], [0], [0], [1], [0, 0, 1, 1], [], []>} : vector<8x512xf32>, vector<512x128xf32>, vector<8x128xf32> -> vector<8x128xf32>
    %59 = vector.broadcast %5 : vector<1x128xf32> to vector<8x128xf32>
    %60 = arith.addf %58, %59 : vector<8x128xf32>
    %c32 = arith.constant 32 : index
    %c0_32 = arith.constant 0 : index
    %61 = vector.load %arg7[%c32, %c0_32] : memref<96x128xf32, #tpu.memory_space<vmem>>, vector<8x128xf32>
    tpu.vector_store %arg7[%c32, %c0_32], %60 {strides = array<i32>} : memref<96x128xf32, #tpu.memory_space<vmem>>, vector<8x128xf32>,
    %c0_33 = arith.constant 0 : index
    %c5 = arith.constant 5 : index
    %62 = memref.load %arg2[%c0_33, %c5] : memref<1x12xf32, #tpu.memory_space<smem>>
    %63 = vector.broadcast %62 : f32 to vector<8x512xf32>
    %64 = arith.mulf %63, %3 : vector<8x512xf32>
    %65 = vector.broadcast %4 : vector<1x512xf32> to vector<8x512xf32>
    %66 = arith.addf %64, %65 : vector<8x512xf32>
    %cst_34 = arith.constant 0.000000e+00 : f32
    %67 = vector.broadcast %cst_34 : f32 to vector<8x512xf32>
    %68 = arith.maximumf %66, %67 : vector<8x512xf32>
    %cst_35 = arith.constant dense<0.000000e+00> : vector<8x128xf32>
    %69 = tpu.matmul %68, %6, %cst_35 {dimension_numbers = #tpu.dot_dimension_numbers<[1], [0], [0], [1], [0, 0, 1, 1], [], []>} : vector<8x512xf32>, vector<512x128xf32>, vector<8x128xf32> -> vector<8x128xf32>
    %70 = vector.broadcast %5 : vector<1x128xf32> to vector<8x128xf32>
    %71 = arith.addf %69, %70 : vector<8x128xf32>
    %c40 = arith.constant 40 : index
    %c0_36 = arith.constant 0 : index
    %72 = vector.load %arg7[%c40, %c0_36] : memref<96x128xf32, #tpu.memory_space<vmem>>, vector<8x128xf32>
    tpu.vector_store %arg7[%c40, %c0_36], %71 {strides = array<i32>} : memref<96x128xf32, #tpu.memory_space<vmem>>, vector<8x128xf32>,
    %c0_37 = arith.constant 0 : index
    %c6 = arith.constant 6 : index
    %73 = memref.load %arg2[%c0_37, %c6] : memref<1x12xf32, #tpu.memory_space<smem>>
    %74 = vector.broadcast %73 : f32 to vector<8x512xf32>
    %75 = arith.mulf %74, %3 : vector<8x512xf32>
    %76 = vector.broadcast %4 : vector<1x512xf32> to vector<8x512xf32>
    %77 = arith.addf %75, %76 : vector<8x512xf32>
    %cst_38 = arith.constant 0.000000e+00 : f32
    %78 = vector.broadcast %cst_38 : f32 to vector<8x512xf32>
    %79 = arith.maximumf %77, %78 : vector<8x512xf32>
    %cst_39 = arith.constant dense<0.000000e+00> : vector<8x128xf32>
    %80 = tpu.matmul %79, %6, %cst_39 {dimension_numbers = #tpu.dot_dimension_numbers<[1], [0], [0], [1], [0, 0, 1, 1], [], []>} : vector<8x512xf32>, vector<512x128xf32>, vector<8x128xf32> -> vector<8x128xf32>
    %81 = vector.broadcast %5 : vector<1x128xf32> to vector<8x128xf32>
    %82 = arith.addf %80, %81 : vector<8x128xf32>
    %c48 = arith.constant 48 : index
    %c0_40 = arith.constant 0 : index
    %83 = vector.load %arg7[%c48, %c0_40] : memref<96x128xf32, #tpu.memory_space<vmem>>, vector<8x128xf32>
    tpu.vector_store %arg7[%c48, %c0_40], %82 {strides = array<i32>} : memref<96x128xf32, #tpu.memory_space<vmem>>, vector<8x128xf32>,
    %c0_41 = arith.constant 0 : index
    %c7 = arith.constant 7 : index
    %84 = memref.load %arg2[%c0_41, %c7] : memref<1x12xf32, #tpu.memory_space<smem>>
    %85 = vector.broadcast %84 : f32 to vector<8x512xf32>
    %86 = arith.mulf %85, %3 : vector<8x512xf32>
    %87 = vector.broadcast %4 : vector<1x512xf32> to vector<8x512xf32>
    %88 = arith.addf %86, %87 : vector<8x512xf32>
    %cst_42 = arith.constant 0.000000e+00 : f32
    %89 = vector.broadcast %cst_42 : f32 to vector<8x512xf32>
    %90 = arith.maximumf %88, %89 : vector<8x512xf32>
    %cst_43 = arith.constant dense<0.000000e+00> : vector<8x128xf32>
    %91 = tpu.matmul %90, %6, %cst_43 {dimension_numbers = #tpu.dot_dimension_numbers<[1], [0], [0], [1], [0, 0, 1, 1], [], []>} : vector<8x512xf32>, vector<512x128xf32>, vector<8x128xf32> -> vector<8x128xf32>
    %92 = vector.broadcast %5 : vector<1x128xf32> to vector<8x128xf32>
    %93 = arith.addf %91, %92 : vector<8x128xf32>
    %c56 = arith.constant 56 : index
    %c0_44 = arith.constant 0 : index
    %94 = vector.load %arg7[%c56, %c0_44] : memref<96x128xf32, #tpu.memory_space<vmem>>, vector<8x128xf32>
    tpu.vector_store %arg7[%c56, %c0_44], %93 {strides = array<i32>} : memref<96x128xf32, #tpu.memory_space<vmem>>, vector<8x128xf32>,
    %c0_45 = arith.constant 0 : index
    %c8_46 = arith.constant 8 : index
    %95 = memref.load %arg2[%c0_45, %c8_46] : memref<1x12xf32, #tpu.memory_space<smem>>
    %96 = vector.broadcast %95 : f32 to vector<8x512xf32>
    %97 = arith.mulf %96, %3 : vector<8x512xf32>
    %98 = vector.broadcast %4 : vector<1x512xf32> to vector<8x512xf32>
    %99 = arith.addf %97, %98 : vector<8x512xf32>
    %cst_47 = arith.constant 0.000000e+00 : f32
    %100 = vector.broadcast %cst_47 : f32 to vector<8x512xf32>
    %101 = arith.maximumf %99, %100 : vector<8x512xf32>
    %cst_48 = arith.constant dense<0.000000e+00> : vector<8x128xf32>
    %102 = tpu.matmul %101, %6, %cst_48 {dimension_numbers = #tpu.dot_dimension_numbers<[1], [0], [0], [1], [0, 0, 1, 1], [], []>} : vector<8x512xf32>, vector<512x128xf32>, vector<8x128xf32> -> vector<8x128xf32>
    %103 = vector.broadcast %5 : vector<1x128xf32> to vector<8x128xf32>
    %104 = arith.addf %102, %103 : vector<8x128xf32>
    %c64 = arith.constant 64 : index
    %c0_49 = arith.constant 0 : index
    %105 = vector.load %arg7[%c64, %c0_49] : memref<96x128xf32, #tpu.memory_space<vmem>>, vector<8x128xf32>
    tpu.vector_store %arg7[%c64, %c0_49], %104 {strides = array<i32>} : memref<96x128xf32, #tpu.memory_space<vmem>>, vector<8x128xf32>,
    %c0_50 = arith.constant 0 : index
    %c9 = arith.constant 9 : index
    %106 = memref.load %arg2[%c0_50, %c9] : memref<1x12xf32, #tpu.memory_space<smem>>
    %107 = vector.broadcast %106 : f32 to vector<8x512xf32>
    %108 = arith.mulf %107, %3 : vector<8x512xf32>
    %109 = vector.broadcast %4 : vector<1x512xf32> to vector<8x512xf32>
    %110 = arith.addf %108, %109 : vector<8x512xf32>
    %cst_51 = arith.constant 0.000000e+00 : f32
    %111 = vector.broadcast %cst_51 : f32 to vector<8x512xf32>
    %112 = arith.maximumf %110, %111 : vector<8x512xf32>
    %cst_52 = arith.constant dense<0.000000e+00> : vector<8x128xf32>
    %113 = tpu.matmul %112, %6, %cst_52 {dimension_numbers = #tpu.dot_dimension_numbers<[1], [0], [0], [1], [0, 0, 1, 1], [], []>} : vector<8x512xf32>, vector<512x128xf32>, vector<8x128xf32> -> vector<8x128xf32>
    %114 = vector.broadcast %5 : vector<1x128xf32> to vector<8x128xf32>
    %115 = arith.addf %113, %114 : vector<8x128xf32>
    %c72 = arith.constant 72 : index
    %c0_53 = arith.constant 0 : index
    %116 = vector.load %arg7[%c72, %c0_53] : memref<96x128xf32, #tpu.memory_space<vmem>>, vector<8x128xf32>
    tpu.vector_store %arg7[%c72, %c0_53], %115 {strides = array<i32>} : memref<96x128xf32, #tpu.memory_space<vmem>>, vector<8x128xf32>,
    %c0_54 = arith.constant 0 : index
    %c10 = arith.constant 10 : index
    %117 = memref.load %arg2[%c0_54, %c10] : memref<1x12xf32, #tpu.memory_space<smem>>
    %118 = vector.broadcast %117 : f32 to vector<8x512xf32>
    %119 = arith.mulf %118, %3 : vector<8x512xf32>
    %120 = vector.broadcast %4 : vector<1x512xf32> to vector<8x512xf32>
    %121 = arith.addf %119, %120 : vector<8x512xf32>
    %cst_55 = arith.constant 0.000000e+00 : f32
    %122 = vector.broadcast %cst_55 : f32 to vector<8x512xf32>
    %123 = arith.maximumf %121, %122 : vector<8x512xf32>
    %cst_56 = arith.constant dense<0.000000e+00> : vector<8x128xf32>
    %124 = tpu.matmul %123, %6, %cst_56 {dimension_numbers = #tpu.dot_dimension_numbers<[1], [0], [0], [1], [0, 0, 1, 1], [], []>} : vector<8x512xf32>, vector<512x128xf32>, vector<8x128xf32> -> vector<8x128xf32>
    %125 = vector.broadcast %5 : vector<1x128xf32> to vector<8x128xf32>
    %126 = arith.addf %124, %125 : vector<8x128xf32>
    %c80 = arith.constant 80 : index
    %c0_57 = arith.constant 0 : index
    %127 = vector.load %arg7[%c80, %c0_57] : memref<96x128xf32, #tpu.memory_space<vmem>>, vector<8x128xf32>
    tpu.vector_store %arg7[%c80, %c0_57], %126 {strides = array<i32>} : memref<96x128xf32, #tpu.memory_space<vmem>>, vector<8x128xf32>,
    %c0_58 = arith.constant 0 : index
    %c11 = arith.constant 11 : index
    %128 = memref.load %arg2[%c0_58, %c11] : memref<1x12xf32, #tpu.memory_space<smem>>
    %129 = vector.broadcast %128 : f32 to vector<8x512xf32>
    %130 = arith.mulf %129, %3 : vector<8x512xf32>
    %131 = vector.broadcast %4 : vector<1x512xf32> to vector<8x512xf32>
    %132 = arith.addf %130, %131 : vector<8x512xf32>
    %cst_59 = arith.constant 0.000000e+00 : f32
    %133 = vector.broadcast %cst_59 : f32 to vector<8x512xf32>
    %134 = arith.maximumf %132, %133 : vector<8x512xf32>
    %cst_60 = arith.constant dense<0.000000e+00> : vector<8x128xf32>
    %135 = tpu.matmul %134, %6, %cst_60 {dimension_numbers = #tpu.dot_dimension_numbers<[1], [0], [0], [1], [0, 0, 1, 1], [], []>} : vector<8x512xf32>, vector<512x128xf32>, vector<8x128xf32> -> vector<8x128xf32>
    %136 = vector.broadcast %5 : vector<1x128xf32> to vector<8x128xf32>
    %137 = arith.addf %135, %136 : vector<8x128xf32>
    %c88 = arith.constant 88 : index
    %c0_61 = arith.constant 0 : index
    %138 = vector.load %arg7[%c88, %c0_61] : memref<96x128xf32, #tpu.memory_space<vmem>>, vector<8x128xf32>
    tpu.vector_store %arg7[%c88, %c0_61], %137 {strides = array<i32>} : memref<96x128xf32, #tpu.memory_space<vmem>>, vector<8x128xf32>,
    return
  }
  func.func @transform_0(%arg0: i32) -> (i32, i32, i32) {
    %c0_i32 = arith.constant 0 : i32
    %c0_i32_0 = arith.constant 0 : i32
    %c0_i32_1 = arith.constant 0 : i32
    return %c0_i32, %arg0, %c0_i32_0 : i32, i32, i32
  }
  func.func @transform_1(%arg0: i32) -> (i32, i32) {
    %c0_i32 = arith.constant 0 : i32
    %c0_i32_0 = arith.constant 0 : i32
    %c0_i32_1 = arith.constant 0 : i32
    return %c0_i32, %c0_i32_0 : i32, i32
  }
  func.func @transform_2(%arg0: i32) -> (i32, i32) {
    %c0_i32 = arith.constant 0 : i32
    %c0_i32_0 = arith.constant 0 : i32
    %c0_i32_1 = arith.constant 0 : i32
    return %c0_i32, %c0_i32_0 : i32, i32
  }
  func.func @transform_3(%arg0: i32) -> (i32, i32) {
    %c0_i32 = arith.constant 0 : i32
    %c0_i32_0 = arith.constant 0 : i32
    %c0_i32_1 = arith.constant 0 : i32
    return %c0_i32, %c0_i32_0 : i32, i32
  }
  func.func @transform_4(%arg0: i32) -> (i32, i32) {
    %c0_i32 = arith.constant 0 : i32
    %c0_i32_0 = arith.constant 0 : i32
    %c0_i32_1 = arith.constant 0 : i32
    return %c0_i32, %c0_i32_0 : i32, i32
  }
  func.func @transform_5(%arg0: i32) -> (i32, i32) {
    %c0_i32 = arith.constant 0 : i32
    %c0_i32_0 = arith.constant 0 : i32
    %c0_i32_1 = arith.constant 0 : i32
    return %c0_i32, %c0_i32_0 : i32, i32
  }
  func.func @transform_6(%arg0: i32) -> (i32, i32) {
    %c0_i32 = arith.constant 0 : i32
    %c0_i32_0 = arith.constant 0 : i32
    return %arg0, %c0_i32 : i32, i32
  }
}

</mosaic_0001>

<bundles_post_ra>
// kernel: tpu_custom_call.1
= control target key start
LH: loop header
LB: loop body
LE: loop exit
PB: predicated region body
PF: predicated region fallthrough
CT: control target
= control target key end

     0   :  { %11 = vsyncpa [#allocation3], 0  ;;  %s4671_s0 = inlined_call_operand.hbm [shape: f32[12,8,128], index: 0, kind: input, shape index: {}]   ;;  %s4672_s1 = inlined_call_operand.vmem [shape: f32[1,12], index: 1, kind: input, shape index: {}]   ;;  %s4673_s2 = inlined_call_operand.hbm [shape: f32[128,512], index: 2, kind: input, shape index: {}]   ;;  %s4674_s3 = inlined_call_operand.vmem [shape: f32[1,512], index: 3, kind: input, shape index: {}]   ;;  %s4675_s4 = inlined_call_operand.hbm [shape: f32[512,128], index: 4, kind: input, shape index: {}]   ;;  %s4676_s5 = inlined_call_operand.vmem [shape: f32[1,128], index: 5, kind: input, shape index: {}]   ;;  %s4677_s6 = inlined_call_operand.hbm [shape: f32[96,128], index: 6, kind: output, shape index: {}]  }
   0x1   :  { %12 = vsyncpa [#allocation5], 0 }
   0x2   :  { %13 = vsyncpa [#allocation8], 0 }
   0x3   :  { %14 = vsyncpa [#allocation4], 0  ;;  %s3305_s21 = smov [#allocation7]  }
   0x4   :  { %s42_s22 = sshll.u32 %s3305_s21, 4  ;;  %s43_s22 = int_to_ptr.vmem [resolvable:$true] %s42_s22 }
   0x5   :  { %s3213_s23 = scalar_lea.vmem %s43_s22, 8192  ;;  %p3218_p1 = scmp.lt.s32.totalorder %s43_s22, %s43_s22 }
   0x6   :  { %p3214_p0 = scmp.ne.s32.totalorder %s43_s22, %s3213_s23  ;;  %p3219_p2 = scmp.lt.s32.totalorder %s3213_s23, %s3213_s23 }
   0x8   :  { %p3220_p3 = por %p3219_p2, %p3218_p1 }
   0xa   :  { %p3221_p4 = pnand %p3220_p3, %p3214_p0 }
   0xc   :  { %3224 = shalt.err (!%p3221_p4)
}
   0xd   :  { %s3306_s24 = smov 512   ;;  %s3307_s25 = smov 32  }
   0xe   :  { %48 = dma.hbm_to_vmem [thread:$0]  %s4673_s2, 8192, %s43_s22, [#allocation8], %s3306_s24, %s3306_s24, %s3307_s25  }
   0xf   :  { %s3308_s28 = smov [#allocation2]  }
  0x10   :  { %s20_s29 = sshll.u32 %s3308_s28, 4  ;;  %s21_s29 = int_to_ptr.vmem [resolvable:$true] %s20_s29 }
  0x11   :  { %s3233_s30 = scalar_lea.vmem %s21_s29, 1536  ;;  %p3238_p6 = scmp.lt.s32.totalorder %s21_s29, %s21_s29 }
  0x12   :  { %p3234_p5 = scmp.ne.s32.totalorder %s21_s29, %s3233_s30  ;;  %p3239_p7 = scmp.lt.s32.totalorder %s3233_s30, %s3233_s30 }
  0x14   :  { %p3240_p8 = por %p3239_p7, %p3238_p6 }
  0x16   :  { %p3241_p9 = pnand %p3240_p8, %p3234_p5 }
  0x18   :  { %3244 = shalt.err (!%p3241_p9)
}
  0x19   :  { %s3309_s7 = smov 128   ;;  %s3310_s8 = smov 8  }
  0x1a   :  { %26 = dma.hbm_to_vmem [thread:$0]  %s4671_s0, 1536, %s21_s29, [#allocation3], %s3309_s7, %s3309_s7, %s3310_s8  }
  0x1b   :  { %s33_s12 = sshll.u32 %s4672_s1, 4  ;;  %s34_s12 = int_to_ptr.vmem [resolvable:$true] %s33_s12 }
  0x1c   :  { %s3245_s13 = scalar_lea.vmem %s34_s12, 16  ;;  %p3250_p11 = scmp.lt.s32.totalorder %s34_s12, %s34_s12 }
  0x1d   :  { %p3246_p10 = scmp.ne.s32.totalorder %s34_s12, %s3245_s13  ;;  %p3251_p12 = scmp.lt.s32.totalorder %s3245_s13, %s3245_s13 }
  0x1f   :  { %p3252_p13 = por %p3251_p12, %p3250_p11 }
  0x21   :  { %p3253_p0 = pnand %p3252_p13, %p3246_p10 }
  0x23   :  { %3256 = shalt.err (!%p3253_p0)
}
  0x24   :  { %s3311_s14 = smov [#allocation6]   ;;  %s3312_s15 = smov [#allocation9]  }
  0x25   :  { %36 = dma.vmem_to_smem %s34_s12, 16, %s3311_s14, [#allocation5]  }
  0x26   :  { %s56_s16 = sshll.u32 %s3312_s15, 4  ;;  %s57_s16 = int_to_ptr.vmem [resolvable:$true] %s56_s16 }
  0x27   :  { %s3265_s17 = scalar_lea.vmem %s57_s16, 8192  ;;  %p3270_p2 = scmp.lt.s32.totalorder %s57_s16, %s57_s16 }
  0x28   :  { %p3266_p1 = scmp.ne.s32.totalorder %s57_s16, %s3265_s17  ;;  %p3271_p3 = scmp.lt.s32.totalorder %s3265_s17, %s3265_s17 }
  0x2a   :  { %p3272_p4 = por %p3271_p3, %p3270_p2 }
  0x2c   :  { %p3273_p5 = pnand %p3272_p4, %p3266_p1 }
  0x2e   :  { %3276 = shalt.err (!%p3273_p5)
}
  0x2f   :  { %62 = dma.hbm_to_vmem [thread:$0]  %s4675_s4, 8192, %s57_s16, [#allocation8], %s3309_s7, %s3309_s7, %s3310_s8  }
  0x30   :  { %3297 = dma.done.wait [#allocation3], 1536  }
  0x31   :  { %3298 = vsyncadd [#allocation3], 4294965760 }
  0x32   :  { %3299 = dma.done.wait [#allocation5], 16  }
  0x33   :  { %3300 = vsyncadd [#allocation5], 4294967280 }
  0x34   :  { %3301 = dma.done.wait [#allocation8], 16384  }
  0x35   :  { %3302 = vsyncadd [#allocation8], 4294950912 }
  0x36   :  { %77 = sfence }
  0x37   :  { %v162_v0 = vld [vmem:[#allocation7 + $0x1e8] sm:$0xff]  ;;  %v164_v1 = vld [vmem:[#allocation7 + $0x1f8] sm:$0xff]  ;;  %v161_v2 = vld [vmem:[#allocation7 + $0x1e0] sm:$0xff]  ;;  %s373_s4 = sld [smem:[#allocation6]] }
  0x38   :  { %165 = vmatprep.subr.mxu0 %v162_v0  ;;  %236 = vmatprep.subr.mxu1 %v164_v1  ;;  %v163_v3 = vld [vmem:[#allocation7 + $0x1f0] sm:$0xff]  ;;  %v158_v4 = vld [vmem:[#allocation7 + $0x1c8] sm:$0xff]  ;;  %v160_v5 = vld [vmem:[#allocation7 + $0x1d8] sm:$0xff]  ;;  %s2281_s18 = sld [smem:[#allocation6 + $0x2]] }
  0x39   :  { %166 = vmatpush1.msra.mxu0 %v161_v2  ;;  %237 = vmatpush1.msra.mxu1 %v163_v3  ;;  %v157_v6 = vld [vmem:[#allocation7 + $0x1c0] sm:$0xff]  ;;  %v159_v7 = vld [vmem:[#allocation7 + $0x1d0] sm:$0xff]  ;;  %v154_v8 = vld [vmem:[#allocation7 + $0x1a8] sm:$0xff]  ;;  %s2280_s19 = sld [smem:[#allocation6 + $0x1]] }
  0x3a   :  { %167 = vmatprep.subr.mxu0 %v158_v4  ;;  %238 = vmatprep.subr.mxu1 %v160_v5  ;;  %v156_v9 = vld [vmem:[#allocation7 + $0x1b8] sm:$0xff]  ;;  %v153_v10 = vld [vmem:[#allocation7 + $0x1a0] sm:$0xff]  ;;  %v155_v11 = vld [vmem:[#allocation7 + $0x1b0] sm:$0xff]  ;;  %s2282_s20 = sld [smem:[#allocation6 + $0x3]] }
  0x3b   :  { %168 = vmatpush1.msra.mxu0 %v157_v6  ;;  %239 = vmatpush1.msra.mxu1 %v159_v7  ;;  %v150_v12 = vld [vmem:[#allocation7 + $0x188] sm:$0xff]  ;;  %v152_v13 = vld [vmem:[#allocation7 + $0x198] sm:$0xff]  ;;  %v149_v14 = vld [vmem:[#allocation7 + $0x180] sm:$0xff]  ;;  %s2284_s23 = sld [smem:[#allocation6 + $0x5]] }
  0x3c   :  { %169 = vmatprep.subr.mxu0 %v154_v8  ;;  %240 = vmatprep.subr.mxu1 %v156_v9  ;;  %v151_v15 = vld [vmem:[#allocation7 + $0x190] sm:$0xff]  ;;  %v146_v16 = vld [vmem:[#allocation7 + $0x168] sm:$0xff]  ;;  %v148_v17 = vld [vmem:[#allocation7 + $0x178] sm:$0xff]  ;;  %s2285_s24 = sld [smem:[#allocation6 + $0x6]] }
  0x3d   :  { %170 = vmatpush1.msra.mxu0 %v153_v10  ;;  %241 = vmatpush1.msra.mxu1 %v155_v11  ;;  %v145_v18 = vld [vmem:[#allocation7 + $0x160] sm:$0xff]  ;;  %v147_v19 = vld [vmem:[#allocation7 + $0x170] sm:$0xff]  ;;  %v142_v20 = vld [vmem:[#allocation7 + $0x148] sm:$0xff]  ;;  %s3625_s25 = sld [smem:[#allocation6 + $0x7]] }
  0x3e   :  { %171 = vmatprep.subr.mxu0 %v150_v12  ;;  %242 = vmatprep.subr.mxu1 %v152_v13  ;;  %v144_v21 = vld [vmem:[#allocation7 + $0x158] sm:$0xff]  ;;  %v141_v22 = vld [vmem:[#allocation7 + $0x140] sm:$0xff]  ;;  %v143_v23 = vld [vmem:[#allocation7 + $0x150] sm:$0xff]  ;;  %s3637_s26 = sld [smem:[#allocation6 + $0x8]] }
  0x3f   :  { %172 = vmatpush1.msra.mxu0 %v149_v14  ;;  %243 = vmatpush1.msra.mxu1 %v151_v15  ;;  %v138_v24 = vld [vmem:[#allocation7 + $0x128] sm:$0xff]  ;;  %v140_v25 = vld [vmem:[#allocation7 + $0x138] sm:$0xff]  ;;  %v137_v26 = vld [vmem:[#allocation7 + $0x120] sm:$0xff]  ;;  %v3313_v15 = vmov 0.0   ;;  %s3657_s27 = sld [smem:[#allocation6 + $0x9]] }
  0x40   :  { %173 = vmatprep.subr.mxu0 %v146_v16  ;;  %244 = vmatprep.subr.mxu1 %v148_v17  ;;  %v139_v27 = vld [vmem:[#allocation7 + $0x130] sm:$0xff]  ;;  %v134_v28 = vld [vmem:[#allocation7 + $0x108] sm:$0xff]  ;;  %v136_v29 = vld [vmem:[#allocation7 + $0x118] sm:$0xff]  ;;  %s3678_s28 = sld [smem:[#allocation6 + $0xa]] }
  0x41   :  { %174 = vmatpush1.msra.mxu0 %v145_v18  ;;  %245 = vmatpush1.msra.mxu1 %v147_v19  ;;  %v133_v30 = vld [vmem:[#allocation7 + $0x100] sm:$0xff]  ;;  %v135_v31 = vld [vmem:[#allocation7 + $0x110] sm:$0xff]  ;;  %v130_v32 = vld [vmem:[#allocation7 + $0xe8] sm:$0xff]  ;;  %s3699_s29 = sld [smem:[#allocation6 + $0xb]] }
  0x42   :  { %175 = vmatprep.subr.mxu0 %v142_v20  ;;  %246 = vmatprep.subr.mxu1 %v144_v21  ;;  %v132_v33 = vld [vmem:[#allocation7 + $0xf8] sm:$0xff]  ;;  %v129_v34 = vld [vmem:[#allocation7 + $0xe0] sm:$0xff]  ;;  %v131_v35 = vld [vmem:[#allocation7 + $0xf0] sm:$0xff] }
  0x43   :  { %176 = vmatpush1.msra.mxu0 %v141_v22  ;;  %247 = vmatpush1.msra.mxu1 %v143_v23  ;;  %v126_v36 = vld [vmem:[#allocation7 + $0xc8] sm:$0xff]  ;;  %v128_v37 = vld [vmem:[#allocation7 + $0xd8] sm:$0xff]  ;;  %v125_v38 = vld [vmem:[#allocation7 + $0xc0] sm:$0xff] }
  0x44   :  { %177 = vmatprep.subr.mxu0 %v138_v24  ;;  %248 = vmatprep.subr.mxu1 %v140_v25  ;;  %v127_v39 = vld [vmem:[#allocation7 + $0xd0] sm:$0xff]  ;;  %v122_v40 = vld [vmem:[#allocation7 + $0xa8] sm:$0xff]  ;;  %v124_v41 = vld [vmem:[#allocation7 + $0xb8] sm:$0xff] }
  0x45   :  { %178 = vmatpush1.msra.mxu0 %v137_v26  ;;  %249 = vmatpush1.msra.mxu1 %v139_v27  ;;  %v121_v42 = vld [vmem:[#allocation7 + $0xa0] sm:$0xff]  ;;  %v123_v43 = vld [vmem:[#allocation7 + $0xb0] sm:$0xff]  ;;  %v118_v44 = vld [vmem:[#allocation7 + $0x88] sm:$0xff] }
  0x46   :  { %179 = vmatprep.subr.mxu0 %v134_v28  ;;  %250 = vmatprep.subr.mxu1 %v136_v29  ;;  %v120_v45 = vld [vmem:[#allocation7 + $0x98] sm:$0xff]  ;;  %v117_v46 = vld [vmem:[#allocation7 + $0x80] sm:$0xff]  ;;  %v119_v47 = vld [vmem:[#allocation7 + $0x90] sm:$0xff] }
  0x47   :  { %180 = vmatpush1.msra.mxu0 %v133_v30  ;;  %251 = vmatpush1.msra.mxu1 %v135_v31  ;;  %v78_v48 = vld [vmem:[#allocation2] sm:$0xff]  ;;  %v79_v49 = vld [vmem:[#allocation2 + $0x8] sm:$0xff]  ;;  %v116_v51 = vld [vmem:[#allocation7 + $0x78] sm:$0xff] }
  0x48   :  { %181 = vmatprep.subr.mxu0 %v130_v32  ;;  %252 = vmatprep.subr.mxu1 %v132_v33  ;;  %v114_v50 = vld [vmem:[#allocation7 + $0x68] sm:$0xff]  ;;  %v80_v52 = vld [vmem:[#allocation2 + $0x10] sm:$0xff]  ;;  %v90_v53 = vadd.f32 %v79_v49, %v78_v48  ;;  %v113_v54 = vld [vmem:[#allocation7 + $0x60] sm:$0xff] }
  0x49   :  { %182 = vmatpush1.msra.mxu0 %v129_v34  ;;  %253 = vmatpush1.msra.mxu1 %v131_v35  ;;  %v115_v55 = vld [vmem:[#allocation7 + $0x70] sm:$0xff]  ;;  %v81_v56 = vld [vmem:[#allocation2 + $0x18] sm:$0xff]  ;;  %v110_v57 = vld [vmem:[#allocation7 + $0x48] sm:$0xff] }
  0x4a   :  { %183 = vmatprep.subr.mxu0 %v126_v36  ;;  %254 = vmatprep.subr.mxu1 %v128_v37  ;;  %v112_v58 = vld [vmem:[#allocation7 + $0x58] sm:$0xff]  ;;  %v91_v59 = vadd.f32 %v90_v53, %v80_v52  ;;  %v109_v60 = vld [vmem:[#allocation7 + $0x40] sm:$0xff]  ;;  %v111_v61 = vld [vmem:[#allocation7 + $0x50] sm:$0xff] }
  0x4b   :  { %184 = vmatpush1.msra.mxu0 %v125_v38  ;;  %255 = vmatpush1.msra.mxu1 %v127_v39  ;;  %v82_v62 = vld [vmem:[#allocation2 + $0x20] sm:$0xff]  ;;  %v106_v63 = vld [vmem:[#allocation7 + $0x28] sm:$0xff]  ;;  %v108_v0 = vld [vmem:[#allocation7 + $0x38] sm:$0xff] }
  0x4c   :  { %185 = vmatprep.subr.mxu0 %v122_v40  ;;  %256 = vmatprep.subr.mxu1 %v124_v41  ;;  %v92_v1 = vadd.f32 %v91_v59, %v81_v56  ;;  %v105_v2 = vld [vmem:[#allocation7 + $0x20] sm:$0xff]  ;;  %v107_v3 = vld [vmem:[#allocation7 + $0x30] sm:$0xff]  ;;  %v83_v4 = vld [vmem:[#allocation2 + $0x28] sm:$0xff] }
  0x4d   :  { %186 = vmatpush1.msra.mxu0 %v121_v42  ;;  %257 = vmatpush1.msra.mxu1 %v123_v43  ;;  %v102_v5 = vld [vmem:[#allocation7 + $0x8] sm:$0xff]  ;;  %v104_v6 = vld [vmem:[#allocation7 + $0x18] sm:$0xff]  ;;  %v101_v8 = vld [vmem:[#allocation7] sm:$0xff] }
  0x4e   :  { %187 = vmatprep.subr.mxu0 %v118_v44  ;;  %258 = vmatprep.subr.mxu1 %v120_v45  ;;  %v93_v7 = vadd.f32 %v92_v1, %v82_v62  ;;  %v84_v9 = vld [vmem:[#allocation2 + $0x30] sm:$0xff]  ;;  %v85_v12 = vld [vmem:[#allocation2 + $0x38] sm:$0xff]  ;;  %v86_v17 = vld [vmem:[#allocation2 + $0x40] sm:$0xff] }
  0x4f   :  { %188 = vmatpush1.msra.mxu0 %v117_v46  ;;  %259 = vmatpush1.msra.mxu1 %v119_v47  ;;  %v103_v10 = vld [vmem:[#allocation7 + $0x10] sm:$0xff]  ;;  %v3368_v13 = vld [vmem:[#allocation9 + $0xf8] sm:$0xff]  ;;  %v87_v19 = vld [vmem:[#allocation2 + $0x48] sm:$0xff] }
  0x50   :  { %189 = vmatprep.subr.mxu0 %v114_v50  ;;  %260 = vmatprep.subr.mxu1 %v116_v51  ;;  %v94_v11 = vadd.f32 %v93_v7, %v83_v4  ;;  %4835 = vst [vmem:[#allocation15_spill] sm:$0xff] %v3368_v13  ;;  %v3370_v14 = vld [vmem:[#allocation9 + $0x1f8] sm:$0xff]  ;;  %v88_v21 = vld [vmem:[#allocation2 + $0x50] sm:$0xff]  ;;  %v3388_v32 = vld [vmem:[#allocation9 + $0xe8] sm:$0xff] }
  0x51   :  { %190 = vmatpush1.msra.mxu0 %v113_v54  ;;  %261 = vmatpush1.msra.mxu1 %v115_v55  ;;  %4836 = vst [vmem:[#allocation16_spill] sm:$0xff] %v3370_v14  ;;  %v89_v23 = vld [vmem:[#allocation2 + $0x58] sm:$0xff]  ;;  %v3378_v28 = vld [vmem:[#allocation9 + $0xf0] sm:$0xff]  ;;  %v3390_v33 = vld [vmem:[#allocation9 + $0x1e8] sm:$0xff] }
  0x52   :  { %191 = vmatprep.subr.mxu0 %v110_v57  ;;  %262 = vmatprep.subr.mxu1 %v112_v58  ;;  %v95_v16 = vadd.f32 %v94_v11, %v84_v9  ;;  %v3374_v26 = vld [vmem:[#allocation9 + $0x78] sm:$0xff]  ;;  %v3380_v29 = vld [vmem:[#allocation9 + $0x1f0] sm:$0xff]  ;;  %v3394_v34 = vld [vmem:[#allocation9 + $0x68] sm:$0xff] }
  0x53   :  { %192 = vmatpush1.msra.mxu0 %v109_v60  ;;  %263 = vmatpush1.msra.mxu1 %v111_v61  ;;  %v3376_v27 = vld [vmem:[#allocation9 + $0x178] sm:$0xff]  ;;  %v3382_v30 = vld [vmem:[#allocation9 + $0x70] sm:$0xff]  ;;  %v3396_v35 = vld [vmem:[#allocation9 + $0x168] sm:$0xff] }
  0x54   :  { %193 = vmatprep.subr.mxu0 %v106_v63  ;;  %264 = vmatprep.subr.mxu1 %v108_v0  ;;  %v96_v18 = vadd.f32 %v95_v16, %v85_v12  ;;  %v3384_v31 = vld [vmem:[#allocation9 + $0x170] sm:$0xff]  ;;  %v3400_v36 = vld [vmem:[#allocation9 + $0xe0] sm:$0xff]  ;;  %v3412_v40 = vld [vmem:[#allocation9 + $0xd8] sm:$0xff] }
  0x55   :  { %194 = vmatpush1.msra.mxu0 %v105_v2  ;;  %265 = vmatpush1.msra.mxu1 %v107_v3  ;;  %v3402_v37 = vld [vmem:[#allocation9 + $0x1e0] sm:$0xff]  ;;  %v3414_v41 = vld [vmem:[#allocation9 + $0x1d8] sm:$0xff]  ;;  %v3424_v44 = vld [vmem:[#allocation9 + $0xd0] sm:$0xff] }
  0x56   :  { %195 = vmatprep.subr.mxu0 %v102_v5  ;;  %266 = vmatprep.subr.mxu1 %v104_v6  ;;  %v97_v20 = vadd.f32 %v96_v18, %v86_v17  ;;  %v3406_v38 = vld [vmem:[#allocation9 + $0x60] sm:$0xff]  ;;  %v3418_v42 = vld [vmem:[#allocation9 + $0x58] sm:$0xff]  ;;  %v3426_v45 = vld [vmem:[#allocation9 + $0x1d0] sm:$0xff] }
  0x57   :  { %196 = vmatpush1.msra.mxu0 %v101_v8  ;;  %229 = vmatprep.mubr.f32.mxu0 %v3313_v15  ;;  %v3408_v39 = vld [vmem:[#allocation9 + $0x160] sm:$0xff]  ;;  %v3420_v43 = vld [vmem:[#allocation9 + $0x158] sm:$0xff]  ;;  %v3430_v46 = vld [vmem:[#allocation9 + $0x50] sm:$0xff] }
  0x58   :  { %267 = vmatpush1.msra.mxu1 %v103_v10  ;;  %300 = vmatprep.mubr.f32.mxu1 %v3313_v15  ;;  %v98_v22 = vadd.f32 %v97_v20, %v87_v19  ;;  %v3432_v47 = vld [vmem:[#allocation9 + $0x150] sm:$0xff]  ;;  %v3436_v48 = vld [vmem:[#allocation9 + $0xc8] sm:$0xff]  ;;  %v3448_v52 = vld [vmem:[#allocation9 + $0xc0] sm:$0xff] }
  0x59   :  { %2291 = vmatprep.subr.mxu0 %v3368_v13  ;;  %2326 = vmatprep.subr.mxu1 %v3370_v14  ;;  %v3438_v49 = vld [vmem:[#allocation9 + $0x1c8] sm:$0xff]  ;;  %v3450_v53 = vld [vmem:[#allocation9 + $0x1c0] sm:$0xff]  ;;  %v3460_v56 = vld [vmem:[#allocation9 + $0xb8] sm:$0xff] }
  0x5a   :  { %v99_v24 = vadd.f32 %v98_v22, %v88_v21  ;;  %v3442_v50 = vld [vmem:[#allocation9 + $0x48] sm:$0xff]  ;;  %v3454_v54 = vld [vmem:[#allocation9 + $0x40] sm:$0xff]  ;;  %v3462_v57 = vld [vmem:[#allocation9 + $0x1b8] sm:$0xff] }
  0x5b   :  { %v3444_v51 = vld [vmem:[#allocation9 + $0x148] sm:$0xff]  ;;  %v3456_v55 = vld [vmem:[#allocation9 + $0x140] sm:$0xff]  ;;  %v3466_v58 = vld [vmem:[#allocation9 + $0x38] sm:$0xff] }
  0x5c   :  { %v100_v25 = vadd.f32 %v99_v24, %v89_v23  ;;  %v3468_v59 = vld [vmem:[#allocation9 + $0x138] sm:$0xff]  ;;  %v3472_v60 = vld [vmem:[#allocation9 + $0xb0] sm:$0xff]  ;;  %v3484_v0 = vld [vmem:[#allocation9 + $0xa8] sm:$0xff] }
  0x5d   :  { %v3474_v61 = vld [vmem:[#allocation9 + $0x1b0] sm:$0xff]  ;;  %4837 = vst [vmem:[#allocation17_spill] sm:$0xff] %v3484_v0  ;;  %v3486_v1 = vld [vmem:[#allocation9 + $0x1a8] sm:$0xff]  ;;  %v3496_v4 = vld [vmem:[#allocation9 + $0xa0] sm:$0xff] }
  0x5e   :  { %230 = vmatmul.mubr.f32.vlgmr.msra.gmra.mxu0 %v100_v25  ;;  %301 = vmatmul.mubr.f32.vlgmr.msra.gmra.mxu1 %v100_v25  ;;  %v3478_v62 = vld [vmem:[#allocation9 + $0x30] sm:$0xff]  ;;  %4838 = vst [vmem:[#allocation18_spill] sm:$0xff] %v3486_v1  ;;  %v3490_v2 = vld [vmem:[#allocation9 + $0x28] sm:$0xff]  ;;  %4841 = vst [vmem:[#allocation21_spill] sm:$0xff] %v3496_v4 }
  0x5f   :  { %2292 = vmatpush3.msra.mxu0 %v3374_v26  ;;  %2327 = vmatpush3.msra.mxu1 %v3376_v27  ;;  %v3480_v63 = vld [vmem:[#allocation9 + $0x130] sm:$0xff]  ;;  %4839 = vst [vmem:[#allocation19_spill] sm:$0xff] %v3490_v2  ;;  %v3492_v3 = vld [vmem:[#allocation9 + $0x128] sm:$0xff]  ;;  %v3498_v5 = vld [vmem:[#allocation9 + $0x1a0] sm:$0xff] }
  0x60   :  { %2293 = vmatprep.subr.mxu0 %v3378_v28  ;;  %2328 = vmatprep.subr.mxu1 %v3380_v29  ;;  %4840 = vst [vmem:[#allocation20_spill] sm:$0xff] %v3492_v3  ;;  %4842 = vst [vmem:[#allocation22_spill] sm:$0xff] %v3498_v5  ;;  %v3506_v6 = vld [vmem:[#allocation9 + $0x20] sm:$0xff]  ;;  %v3512_v8 = vld [vmem:[#allocation9 + $0x98] sm:$0xff] }
  0x61   :  { %2294 = vmatpush3.msra.mxu0 %v3382_v30  ;;  %2329 = vmatpush3.msra.mxu1 %v3384_v31  ;;  %4843 = vst [vmem:[#allocation23_spill] sm:$0xff] %v3506_v6  ;;  %v3508_v7 = vld [vmem:[#allocation9 + $0x120] sm:$0xff]  ;;  %4845 = vst [vmem:[#allocation25_spill] sm:$0xff] %v3512_v8  ;;  %v3514_v9 = vld [vmem:[#allocation9 + $0x198] sm:$0xff] }
  0x62   :  { %2295 = vmatprep.subr.mxu0 %v3388_v32  ;;  %2330 = vmatprep.subr.mxu1 %v3390_v33  ;;  %4844 = vst [vmem:[#allocation24_spill] sm:$0xff] %v3508_v7  ;;  %4846 = vst [vmem:[#allocation26_spill] sm:$0xff] %v3514_v9  ;;  %v3518_v10 = vld [vmem:[#allocation9 + $0x18] sm:$0xff]  ;;  %v3524_v12 = vld [vmem:[#allocation9 + $0x90] sm:$0xff] }
  0x63   :  { %2296 = vmatpush3.msra.mxu0 %v3394_v34  ;;  %2331 = vmatpush3.msra.mxu1 %v3396_v35  ;;  %4847 = vst [vmem:[#allocation27_spill] sm:$0xff] %v3518_v10  ;;  %v3520_v11 = vld [vmem:[#allocation9 + $0x118] sm:$0xff]  ;;  %4849 = vst [vmem:[#allocation29_spill] sm:$0xff] %v3524_v12  ;;  %v3526_v15 = vld [vmem:[#allocation9 + $0x190] sm:$0xff] }
  0x64   :  { %2297 = vmatprep.subr.mxu0 %v3400_v36  ;;  %2332 = vmatprep.subr.mxu1 %v3402_v37  ;;  %4848 = vst [vmem:[#allocation28_spill] sm:$0xff] %v3520_v11  ;;  %4850 = vst [vmem:[#allocation30_spill] sm:$0xff] %v3526_v15  ;;  %v3528_v16 = vld [vmem:[#allocation9 + $0x10] sm:$0xff]  ;;  %v3534_v18 = vld [vmem:[#allocation9 + $0x88] sm:$0xff] }
  0x65   :  { %2298 = vmatpush3.msra.mxu0 %v3406_v38  ;;  %2333 = vmatpush3.msra.mxu1 %v3408_v39  ;;  %4851 = vst [vmem:[#allocation31_spill] sm:$0xff] %v3528_v16  ;;  %v3532_v17 = vld [vmem:[#allocation9 + $0x110] sm:$0xff]  ;;  %4853 = vst [vmem:[#allocation33_spill] sm:$0xff] %v3534_v18  ;;  %v3536_v19 = vld [vmem:[#allocation9 + $0x188] sm:$0xff] }
  0x66   :  { %2299 = vmatprep.subr.mxu0 %v3412_v40  ;;  %2334 = vmatprep.subr.mxu1 %v3414_v41  ;;  %4852 = vst [vmem:[#allocation32_spill] sm:$0xff] %v3532_v17  ;;  %4854 = vst [vmem:[#allocation34_spill] sm:$0xff] %v3536_v19  ;;  %v3540_v20 = vld [vmem:[#allocation9 + $0x8] sm:$0xff]  ;;  %v3544_v22 = vld [vmem:[#allocation9 + $0x80] sm:$0xff] }
  0x67   :  { %2300 = vmatpush3.msra.mxu0 %v3418_v42  ;;  %2335 = vmatpush3.msra.mxu1 %v3420_v43  ;;  %4855 = vst [vmem:[#allocation35_spill] sm:$0xff] %v3540_v20  ;;  %v3542_v21 = vld [vmem:[#allocation9 + $0x108] sm:$0xff]  ;;  %4857 = vst [vmem:[#allocation37_spill] sm:$0xff] %v3544_v22  ;;  %v3548_v23 = vld [vmem:[#allocation9 + $0x180] sm:$0xff] }
  0x68   :  { %2301 = vmatprep.subr.mxu0 %v3424_v44  ;;  %2336 = vmatprep.subr.mxu1 %v3426_v45  ;;  %4856 = vst [vmem:[#allocation36_spill] sm:$0xff] %v3542_v21  ;;  %4858 = vst [vmem:[#allocation38_spill] sm:$0xff] %v3548_v23  ;;  %v3550_v24 = vld [vmem:[#allocation9] sm:$0xff] }
  0x69   :  { %2302 = vmatpush3.msra.mxu0 %v3430_v46  ;;  %2337 = vmatpush3.msra.mxu1 %v3432_v47  ;;  %4859 = vst [vmem:[#allocation39_spill] sm:$0xff] %v3550_v24  ;;  %v3552_v25 = vld [vmem:[#allocation9 + $0x100] sm:$0xff] }
  0x6a   :  { %2303 = vmatprep.subr.mxu0 %v3436_v48  ;;  %2338 = vmatprep.subr.mxu1 %v3438_v49  ;;  %4860 = vst [vmem:[#allocation40_spill] sm:$0xff] %v3552_v25 }
  0x6b   :  { %2304 = vmatpush3.msra.mxu0 %v3442_v50  ;;  %2339 = vmatpush3.msra.mxu1 %v3444_v51 }
  0x6c   :  { %2305 = vmatprep.subr.mxu0 %v3448_v52  ;;  %2340 = vmatprep.subr.mxu1 %v3450_v53 }
  0x6d   :  { %2306 = vmatpush3.msra.mxu0 %v3454_v54  ;;  %2341 = vmatpush3.msra.mxu1 %v3456_v55 }
  0x6e   :  { %2307 = vmatprep.subr.mxu0 %v3460_v56  ;;  %2342 = vmatprep.subr.mxu1 %v3462_v57 }
  0x6f   :  { %2308 = vmatpush3.msra.mxu0 %v3466_v58  ;;  %2343 = vmatpush3.msra.mxu1 %v3468_v59 }
  0x70   :  { %2309 = vmatprep.subr.mxu0 %v3472_v60  ;;  %2344 = vmatprep.subr.mxu1 %v3474_v61 }
  0x71   :  { %2310 = vmatpush3.msra.mxu0 %v3478_v62  ;;  %2345 = vmatpush3.msra.mxu1 %v3480_v63 }
  0x72   :  { %2311 = vmatprep.subr.mxu0 %v3484_v0  ;;  %2346 = vmatprep.subr.mxu1 %v3486_v1 }
  0x73   :  { %2312 = vmatpush3.msra.mxu0 %v3490_v2  ;;  %2347 = vmatpush3.msra.mxu1 %v3492_v3 }
  0x74   :  { %2313 = vmatprep.subr.mxu0 %v3496_v4  ;;  %2348 = vmatprep.subr.mxu1 %v3498_v5 }
  0x75   :  { %2314 = vmatpush3.msra.mxu0 %v3506_v6  ;;  %2349 = vmatpush3.msra.mxu1 %v3508_v7 }
  0x76   :  { %2315 = vmatprep.subr.mxu0 %v3512_v8  ;;  %2350 = vmatprep.subr.mxu1 %v3514_v9  ;;  %v3585_v9 = vstv %s2280_s19  ;;  %v3587_v8 = vstv %s2282_s20 }
  0x77   :  { %2316 = vmatpush3.msra.mxu0 %v3518_v10  ;;  %2351 = vmatpush3.msra.mxu1 %v3520_v11  ;;  %4865 = vst [vmem:[#allocation45_spill] sm:$0xff] %v3585_v9  ;;  %4866 = vst [vmem:[#allocation46_spill] sm:$0xff] %v3587_v8 }
  0x78   :  { %2317 = vmatprep.subr.mxu0 %v3524_v12  ;;  %2352 = vmatprep.subr.mxu1 %v3526_v15 }
  0x79   :  { %2318 = vmatpush3.msra.mxu0 %v3528_v16  ;;  %2353 = vmatpush3.msra.mxu1 %v3532_v17  ;;  %v374_v17 = vstv %s373_s4 }
  0x7a   :  { %2319 = vmatprep.subr.mxu0 %v3534_v18  ;;  %2354 = vmatprep.subr.mxu1 %v3536_v19  ;;  %v380_v19 = vlaneseq }
  0x7b   :  { %2320 = vmatpush3.msra.mxu0 %v3540_v20  ;;  %2355 = vmatpush3.msra.mxu1 %v3542_v21 }
  0x7c   :  { %2321 = vmatprep.subr.mxu0 %v3544_v22  ;;  %2356 = vmatprep.subr.mxu1 %v3548_v23  ;;  %v381_v18 = vshrl.u32 %v380_v19, 7  ;;  %v307_v23 = vld [vmem:[%s4674_s3] sm:$0xf]  ;;  %v3573_v19 = vstv %s2281_s18  ;;  %s2283_s3 = sld [smem:[#allocation6 + $0x4]] }
  0x7d   :  { %2322 = vmatpush3.msra.mxu0 %v3550_v24  ;;  %2357 = vmatpush3.msra.mxu1 %v3552_v25  ;;  %4861 = vst [vmem:[#allocation41_spill] sm:$0xff] %v3573_v19 }
  0x7e   :  { %2361 = vmatprep.subr.mxu0 %v3368_v13  ;;  %2396 = vmatprep.subr.mxu1 %v3370_v14  ;;  %v390_v20 = vsub.s32 2, %v381_v18  ;;  %v382_v21 = vsub.s32 0, %v381_v18  ;;  %v386_v22 = vsub.s32 1, %v381_v18  ;;  %v394_v24 = vsub.s32 3, %v381_v18 }
  0x80   :  { %v3565_v25 = vrot.slane %v307_v23, %v390_v20  ;;  %v3571_v16 = vrot.slane %v307_v23, %v382_v21  ;;  %v3575_v15 = vrot.slane %v307_v23, %v386_v22  ;;  %v3577_v12 = vrot.slane %v307_v23, %v394_v24 }
  0x82   :  { %4862 = vst [vmem:[#allocation42_spill] sm:$0xff] %v3575_v15 }
 0x11e   :  { %v3567_v13 = vpop.f32.mrf.mxu0  ;;  %v3569_v14 = vpop.f32.mrf.mxu1 }
 0x11f   :  { %v375_v11 = vmul.f32 %v374_v17, %v3567_v13  ;;  %v377_v10 = vmul.f32 %v374_v17, %v3569_v14  ;;  %v712_v24 = vmul.f32 %v3573_v19, %v3567_v13  ;;  %v714_v4 = vmul.f32 %v3573_v19, %v3569_v14 }
 0x120   :  { %v3581_v18 = vpop.f32.mrf.mxu0  ;;  %v3583_v20 = vpop.f32.mrf.mxu1 }
 0x121   :  { %4863 = vst [vmem:[#allocation43_spill] sm:$0xff] %v3581_v18  ;;  %4864 = vst [vmem:[#allocation44_spill] sm:$0xff] %v3583_v20  ;;  %v376_v21 = vmul.f32 %v374_v17, %v3581_v18  ;;  %v378_v22 = vmul.f32 %v374_v17, %v3583_v20  ;;  %v402_v23 = vadd.f32 %v3565_v25, %v377_v10 }
 0x122   :  { %v400_v7 = vadd.f32 %v3571_v16, %v375_v11  ;;  %v558_v6 = vmul.f32 %v3585_v9, %v3581_v18  ;;  %v560_v5 = vmul.f32 %v3585_v9, %v3583_v20  ;;  %v867_v11 = vmul.f32 %v3587_v8, %v3567_v13 }
 0x123   :  { %v401_v3 = vadd.f32 %v3575_v15, %v376_v21  ;;  %v403_v17 = vadd.f32 %v3577_v12, %v378_v22  ;;  %v406_v10 = vmax.f32 %v402_v23, 0.0  ;;  %v869_v20 = vmul.f32 %v3587_v8, %v3569_v14 }
 0x124   :  { %v562_v2 = vadd.f32 %v558_v6, %v3575_v15  ;;  %v564_v18 = vadd.f32 %v560_v5, %v3577_v12  ;;  %v404_v9 = vmax.f32 %v400_v7, 0.0  ;;  %v3610_v19 = vadd.f32 %v712_v24, %v3571_v16 }
 0x125   :  { %v405_v1 = vmax.f32 %v401_v3, 0.0  ;;  %v407_v0 = vmax.f32 %v403_v17, 0.0  ;;  %v3613_v21 = vadd.f32 %v714_v4, %v3565_v25  ;;  %v3616_v3 = vadd.f32 %v867_v11, %v3571_v16 }
 0x126   :  { %4867 = vst [vmem:[#allocation47_spill] sm:$0xff] %v3610_v19  ;;  %v566_v6 = vmax.f32 %v562_v2, 0.0  ;;  %v3618_v5 = vstv %s2283_s3  ;;  %v568_v7 = vmax.f32 %v564_v18, 0.0  ;;  %v3623_v22 = vadd.f32 %v869_v20, %v3565_v25  ;;  %v4903_v19 = vld [vmem:[#allocation26_spill] sm:$0xff] }
 0x127   :  { %4868 = vst [vmem:[#allocation48_spill] sm:$0xff] %v3613_v21  ;;  %478 = vmatprep.mubr.f32.mxu0 %v405_v1  ;;  %548 = vmatprep.mubr.f32.mxu1 %v407_v0  ;;  %4869 = vst [vmem:[#allocation49_spill] sm:$0xff] %v3616_v3  ;;  %v1022_v0 = vmul.f32 %v3618_v5, %v3567_v13  ;;  %v1024_v1 = vmul.f32 %v3618_v5, %v3569_v14  ;;  %v3633_v2 = vstv %s2284_s23  ;;  %v4901_v3 = vld [vmem:[#allocation24_spill] sm:$0xff]  ;;  %v4902_v21 = vld [vmem:[#allocation25_spill] sm:$0xff] }
 0x128   :  { %479 = vmatmul.mubr.f32.vlgmr.msra.gmra.mxu0 %v404_v9  ;;  %549 = vmatmul.mubr.f32.vlgmr.msra.gmra.mxu1 %v406_v10  ;;  %4870 = vst [vmem:[#allocation50_spill] sm:$0xff] %v3618_v5  ;;  %4871 = vst [vmem:[#allocation51_spill] sm:$0xff] %v3623_v22  ;;  %v1177_v18 = vmul.f32 %v3633_v2, %v3567_v13  ;;  %v3651_v20 = vstv %s2285_s24  ;;  %v1179_v23 = vmul.f32 %v3633_v2, %v3569_v14  ;;  %v4900_v22 = vld [vmem:[#allocation23_spill] sm:$0xff] }
 0x129   :  { %2362 = vmatpush3.msra.mxu0 %v3374_v26  ;;  %2397 = vmatpush3.msra.mxu1 %v3376_v27  ;;  %4872 = vst [vmem:[#allocation52_spill] sm:$0xff] %v3633_v2  ;;  %v3642_v4 = vadd.f32 %v1022_v0, %v3571_v16  ;;  %v3645_v9 = vadd.f32 %v1024_v1, %v3565_v25  ;;  %4875 = vst [vmem:[#allocation55_spill] sm:$0xff] %v3651_v20  ;;  %v4897_v2 = vld [vmem:[#allocation22_spill] sm:$0xff]  ;;  %v4904_v8 = vld [vmem:[#allocation43_spill] sm:$0xff] }
 0x12a   :  { %2363 = vmatprep.subr.mxu0 %v3378_v28  ;;  %633 = vmatprep.mubr.f32.mxu0 %v566_v6  ;;  %v3662_v24 = vadd.f32 %v1177_v18, %v3571_v16  ;;  %v3667_v17 = vadd.f32 %v1179_v23, %v3565_v25  ;;  %v1332_v10 = vmul.f32 %v3651_v20, %v3567_v13  ;;  %v3674_v6 = vstv %s3625_s25 }
 0x12b   :  { %2398 = vmatprep.subr.mxu1 %v3380_v29  ;;  %703 = vmatprep.mubr.f32.mxu1 %v568_v7  ;;  %4873 = vst [vmem:[#allocation53_spill] sm:$0xff] %v3642_v4  ;;  %4874 = vst [vmem:[#allocation54_spill] sm:$0xff] %v3645_v9  ;;  %v1334_v11 = vmul.f32 %v3651_v20, %v3569_v14  ;;  %v1487_v1 = vmul.f32 %v3674_v6, %v3567_v13  ;;  %v3693_v18 = vstv %s3637_s26  ;;  %v4893_v20 = vld [vmem:[#allocation19_spill] sm:$0xff]  ;;  %v4894_v9 = vld [vmem:[#allocation20_spill] sm:$0xff] }
 0x12c   :  { %2364 = vmatpush3.msra.mxu0 %v3382_v30  ;;  %2399 = vmatpush3.msra.mxu1 %v3384_v31  ;;  %4876 = vst [vmem:[#allocation56_spill] sm:$0xff] %v3662_v24  ;;  %4877 = vst [vmem:[#allocation57_spill] sm:$0xff] %v3667_v17  ;;  %v3683_v7 = vadd.f32 %v1332_v10, %v3571_v16  ;;  %v1489_v23 = vmul.f32 %v3674_v6, %v3569_v14  ;;  %v3754_v24 = vstv %s3699_s29  ;;  %v4896_v4 = vld [vmem:[#allocation21_spill] sm:$0xff] }
 0x12d   :  { %2365 = vmatprep.subr.mxu0 %v3388_v32  ;;  %2400 = vmatprep.subr.mxu1 %v3390_v33  ;;  %4878 = vst [vmem:[#allocation58_spill] sm:$0xff] %v3674_v6  ;;  %v3686_v0 = vadd.f32 %v1334_v11, %v3565_v25  ;;  %4881 = vst [vmem:[#allocation61_spill] sm:$0xff] %v3693_v18  ;;  %v3704_v10 = vadd.f32 %v1487_v1, %v3571_v16  ;;  %v3716_v6 = vstv %s3657_s27 }
 0x12e   :  { %2366 = vmatpush3.msra.mxu0 %v3394_v34  ;;  %2401 = vmatpush3.msra.mxu1 %v3396_v35  ;;  %4879 = vst [vmem:[#allocation59_spill] sm:$0xff] %v3683_v7  ;;  %v3709_v11 = vadd.f32 %v1489_v23, %v3565_v25  ;;  %v1644_v7 = vmul.f32 %v3693_v18, %v3569_v14  ;;  %4884 = vst [vmem:[#allocation64_spill] sm:$0xff] %v3716_v6 }
 0x12f   :  { %2367 = vmatprep.subr.mxu0 %v3400_v36  ;;  %2402 = vmatprep.subr.mxu1 %v3402_v37  ;;  %4880 = vst [vmem:[#allocation60_spill] sm:$0xff] %v3686_v0  ;;  %4882 = vst [vmem:[#allocation62_spill] sm:$0xff] %v3704_v10  ;;  %v1642_v0 = vmul.f32 %v3693_v18, %v3567_v13  ;;  %v3733_v10 = vstv %s3678_s28  ;;  %v2107_v5 = vmul.f32 %v3754_v24, %v3567_v13 }
 0x130   :  { %2368 = vmatpush3.msra.mxu0 %v3406_v38  ;;  %2403 = vmatpush3.msra.mxu1 %v3408_v39  ;;  %4883 = vst [vmem:[#allocation63_spill] sm:$0xff] %v3709_v11  ;;  %v3726_v23 = vadd.f32 %v1644_v7, %v3565_v25  ;;  %v1797_v11 = vmul.f32 %v3716_v6, %v3567_v13  ;;  %4887 = vst [vmem:[#allocation67_spill] sm:$0xff] %v3733_v10 }
 0x131   :  { %2369 = vmatprep.subr.mxu0 %v3412_v40  ;;  %2404 = vmatprep.subr.mxu1 %v3414_v41  ;;  %v3723_v1 = vadd.f32 %v1642_v0, %v3571_v16  ;;  %v1799_v0 = vmul.f32 %v3716_v6, %v3569_v14  ;;  %v1952_v17 = vmul.f32 %v3733_v10, %v3567_v13 }
 0x132   :  { %2370 = vmatpush3.msra.mxu0 %v3418_v42  ;;  %2405 = vmatpush3.msra.mxu1 %v3420_v43  ;;  %4886 = vst [vmem:[#allocation66_spill] sm:$0xff] %v3726_v23  ;;  %v3742_v7 = vadd.f32 %v1797_v11, %v3571_v16  ;;  %v4889_v23 = vld [vmem:[#allocation17_spill] sm:$0xff]  ;;  %v1954_v6 = vmul.f32 %v3733_v10, %v3569_v14  ;;  %4892 = vst [vmem:[#allocation69_spill] sm:$0xff] %v3754_v24 }
 0x133   :  { %2371 = vmatprep.subr.mxu0 %v3424_v44  ;;  %2406 = vmatprep.subr.mxu1 %v3426_v45  ;;  %4885 = vst [vmem:[#allocation65_spill] sm:$0xff] %v3723_v1  ;;  %v4890_v1 = vld [vmem:[#allocation18_spill] sm:$0xff]  ;;  %v3747_v18 = vadd.f32 %v1799_v0, %v3565_v25  ;;  %v4895_v11 = vld [vmem:[#allocation45_spill] sm:$0xff] }
 0x134   :  { %2372 = vmatpush3.msra.mxu0 %v3430_v46  ;;  %2407 = vmatpush3.msra.mxu1 %v3432_v47  ;;  %4888 = vst [vmem:[#allocation68_spill] sm:$0xff] %v3742_v7  ;;  %v557_v7 = vmul.f32 %v4895_v11, %v3567_v13  ;;  %v559_v0 = vmul.f32 %v4895_v11, %v3569_v14  ;;  %v4910_v13 = vld [vmem:[#allocation29_spill] sm:$0xff] }
 0x135   :  { %2373 = vmatprep.subr.mxu0 %v3436_v48  ;;  %2408 = vmatprep.subr.mxu1 %v3438_v49  ;;  %4891 = vst [vmem:[#allocation17_spill] sm:$0xff] %v3747_v18  ;;  %v3765_v18 = vadd.f32 %v1952_v17, %v3571_v16  ;;  %v3768_v10 = vadd.f32 %v1954_v6, %v3565_v25  ;;  %v4907_v6 = vld [vmem:[#allocation28_spill] sm:$0xff] }
 0x136   :  { %2374 = vmatpush3.msra.mxu0 %v3442_v50  ;;  %2409 = vmatpush3.msra.mxu1 %v3444_v51  ;;  %v2109_v17 = vmul.f32 %v3754_v24, %v3569_v14  ;;  %v4913_v24 = vld [vmem:[#allocation31_spill] sm:$0xff] }
 0x137   :  { %2375 = vmatprep.subr.mxu0 %v3448_v52  ;;  %2410 = vmatprep.subr.mxu1 %v3450_v53  ;;  %4898 = vst [vmem:[#allocation45_spill] sm:$0xff] %v3765_v18  ;;  %4899 = vst [vmem:[#allocation70_spill] sm:$0xff] %v3768_v10  ;;  %v4906_v18 = vld [vmem:[#allocation27_spill] sm:$0xff]  ;;  %v4908_v10 = vld [vmem:[#allocation44_spill] sm:$0xff] }
 0x138   :  { %2376 = vmatpush3.msra.mxu0 %v3454_v54  ;;  %2411 = vmatpush3.msra.mxu1 %v3456_v55  ;;  %v3792_v14 = vadd.f32 %v2109_v17, %v3565_v25 }
 0x139   :  { %2377 = vmatprep.subr.mxu0 %v3460_v56  ;;  %2412 = vmatprep.subr.mxu1 %v3462_v57 }
 0x13a   :  { %2378 = vmatpush3.msra.mxu0 %v3466_v58  ;;  %2413 = vmatpush3.msra.mxu1 %v3468_v59  ;;  %4912 = vst [vmem:[#allocation44_spill] sm:$0xff] %v3792_v14  ;;  %v4921_v14 = vld [vmem:[#allocation39_spill] sm:$0xff] }
 0x13b   :  { %2379 = vmatprep.subr.mxu0 %v3472_v60  ;;  %2414 = vmatprep.subr.mxu1 %v3474_v61 }
 0x13c   :  { %2380 = vmatpush3.msra.mxu0 %v3478_v62  ;;  %2415 = vmatpush3.msra.mxu1 %v3480_v63 }
 0x13d   :  { %2381 = vmatprep.subr.mxu0 %v4889_v23  ;;  %2416 = vmatprep.subr.mxu1 %v4890_v1 }
 0x13e   :  { %2382 = vmatpush3.msra.mxu0 %v4893_v20  ;;  %2417 = vmatpush3.msra.mxu1 %v4894_v9 }
 0x13f   :  { %2383 = vmatprep.subr.mxu0 %v4896_v4  ;;  %2418 = vmatprep.subr.mxu1 %v4897_v2  ;;  %v4905_v2 = vld [vmem:[#allocation41_spill] sm:$0xff] }
 0x140   :  { %2384 = vmatpush3.msra.mxu0 %v4900_v22  ;;  %2419 = vmatpush3.msra.mxu1 %v4901_v3  ;;  %v713_v11 = vmul.f32 %v4905_v2, %v4904_v8  ;;  %v715_v3 = vmul.f32 %v4905_v2, %v4908_v10  ;;  %v3785_v22 = vadd.f32 %v2107_v5, %v3571_v16  ;;  %v4916_v2 = vld [vmem:[#allocation34_spill] sm:$0xff] }
 0x141   :  { %2385 = vmatprep.subr.mxu0 %v4902_v21  ;;  %2420 = vmatprep.subr.mxu1 %v4903_v19  ;;  %v4911_v21 = vld [vmem:[#allocation30_spill] sm:$0xff]  ;;  %v561_v19 = vadd.f32 %v557_v7, %v3571_v16  ;;  %v563_v8 = vadd.f32 %v559_v0, %v3565_v25  ;;  %v4919_v7 = vld [vmem:[#allocation37_spill] sm:$0xff] }
 0x142   :  { %2386 = vmatpush3.msra.mxu0 %v4906_v18  ;;  %2421 = vmatpush3.msra.mxu1 %v4907_v6  ;;  %4909 = vst [vmem:[#allocation41_spill] sm:$0xff] %v3785_v22  ;;  %v4914_v6 = vld [vmem:[#allocation32_spill] sm:$0xff]  ;;  %v4915_v18 = vld [vmem:[#allocation33_spill] sm:$0xff]  ;;  %v717_v5 = vadd.f32 %v713_v11, %v3575_v15  ;;  %v4917_v22 = vld [vmem:[#allocation35_spill] sm:$0xff]  ;;  %v719_v16 = vadd.f32 %v715_v3, %v3577_v12 }
 0x143   :  { %2387 = vmatprep.subr.mxu0 %v4910_v13  ;;  %2422 = vmatprep.subr.mxu1 %v4911_v21  ;;  %v4918_v21 = vld [vmem:[#allocation36_spill] sm:$0xff]  ;;  %v4920_v25 = vld [vmem:[#allocation38_spill] sm:$0xff]  ;;  %v565_v0 = vmax.f32 %v561_v19, 0.0  ;;  %v567_v17 = vmax.f32 %v563_v8, 0.0  ;;  %v4923_v11 = vld [vmem:[#allocation15_spill] sm:$0xff] }
 0x144   :  { %2388 = vmatpush3.msra.mxu0 %v4913_v24  ;;  %2423 = vmatpush3.msra.mxu1 %v4914_v6  ;;  %v4922_v6 = vld [vmem:[#allocation40_spill] sm:$0xff]  ;;  %v4925_v8 = vld [vmem:[#allocation22_spill] sm:$0xff]  ;;  %v4926_v19 = vld [vmem:[#allocation23_spill] sm:$0xff] }
 0x145   :  { %2389 = vmatprep.subr.mxu0 %v4915_v18  ;;  %2424 = vmatprep.subr.mxu1 %v4916_v2  ;;  %v721_v2 = vmax.f32 %v717_v5, 0.0  ;;  %v4928_v3 = vld [vmem:[#allocation25_spill] sm:$0xff]  ;;  %v4930_v5 = vld [vmem:[#allocation43_spill] sm:$0xff] }
 0x146   :  { %2390 = vmatpush3.msra.mxu0 %v4917_v22  ;;  %2425 = vmatpush3.msra.mxu1 %v4918_v21  ;;  %v4924_v22 = vld [vmem:[#allocation16_spill] sm:$0xff]  ;;  %v723_v21 = vmax.f32 %v719_v16, 0.0  ;;  %v4931_v16 = vld [vmem:[#allocation46_spill] sm:$0xff] }
 0x147   :  { %2391 = vmatprep.subr.mxu0 %v4919_v7  ;;  %2426 = vmatprep.subr.mxu1 %v4920_v25 }
 0x148   :  { %2392 = vmatpush3.msra.mxu0 %v4921_v14  ;;  %2427 = vmatpush3.msra.mxu1 %v4922_v6 }
 0x149   :  { %634 = vmatmul.mubr.f32.vlgmr.msra.gmra.mxu0 %v565_v0  ;;  %704 = vmatmul.mubr.f32.vlgmr.msra.gmra.mxu1 %v567_v17  ;;  %v868_v0 = vmul.f32 %v4931_v16, %v4930_v5  ;;  %v4932_v17 = vld [vmem:[#allocation27_spill] sm:$0xff] }
 0x14a   :  { %2431 = vmatprep.subr.mxu0 %v4923_v11  ;;  %2466 = vmatprep.subr.mxu1 %v4924_v22 }
 0x14b   :  { %2432 = vmatpush3.msra.mxu0 %v3374_v26  ;;  %788 = vmatprep.mubr.f32.mxu0 %v721_v2  ;;  %v4929_v2 = vld [vmem:[#allocation26_spill] sm:$0xff]  ;;  %v872_v5 = vadd.f32 %v868_v0, %v3575_v15 }
 0x14c   :  { %2467 = vmatpush3.msra.mxu1 %v3376_v27  ;;  %858 = vmatprep.mubr.f32.mxu1 %v723_v21  ;;  %v4927_v21 = vld [vmem:[#allocation24_spill] sm:$0xff] }
 0x14d   :  { %2433 = vmatprep.subr.mxu0 %v3378_v28  ;;  %2468 = vmatprep.subr.mxu1 %v3380_v29  ;;  %v876_v0 = vmax.f32 %v872_v5, 0.0  ;;  %v4945_v5 = vld [vmem:[#allocation26_spill] sm:$0xff] }
 0x14e   :  { %2434 = vmatpush3.msra.mxu0 %v3382_v30  ;;  %2469 = vmatpush3.msra.mxu1 %v3384_v31 }
 0x14f   :  { %2435 = vmatprep.subr.mxu0 %v3388_v32  ;;  %2470 = vmatprep.subr.mxu1 %v3390_v33 }
 0x150   :  { %2436 = vmatpush3.msra.mxu0 %v3394_v34  ;;  %2471 = vmatpush3.msra.mxu1 %v3396_v35 }
 0x151   :  { %2437 = vmatprep.subr.mxu0 %v3400_v36  ;;  %2472 = vmatprep.subr.mxu1 %v3402_v37 }
 0x152   :  { %2438 = vmatpush3.msra.mxu0 %v3406_v38  ;;  %2473 = vmatpush3.msra.mxu1 %v3408_v39 }
 0x153   :  { %2439 = vmatprep.subr.mxu0 %v3412_v40  ;;  %2474 = vmatprep.subr.mxu1 %v3414_v41 }
 0x154   :  { %2440 = vmatpush3.msra.mxu0 %v3418_v42  ;;  %2475 = vmatpush3.msra.mxu1 %v3420_v43 }
 0x155   :  { %2441 = vmatprep.subr.mxu0 %v3424_v44  ;;  %2476 = vmatprep.subr.mxu1 %v3426_v45 }
 0x156   :  { %2442 = vmatpush3.msra.mxu0 %v3430_v46  ;;  %2477 = vmatpush3.msra.mxu1 %v3432_v47 }
 0x157   :  { %2443 = vmatprep.subr.mxu0 %v3436_v48  ;;  %2478 = vmatprep.subr.mxu1 %v3438_v49 }
 0x158   :  { %2444 = vmatpush3.msra.mxu0 %v3442_v50  ;;  %2479 = vmatpush3.msra.mxu1 %v3444_v51 }
 0x159   :  { %2445 = vmatprep.subr.mxu0 %v3448_v52  ;;  %2480 = vmatprep.subr.mxu1 %v3450_v53 }
 0x15a   :  { %2446 = vmatpush3.msra.mxu0 %v3454_v54  ;;  %2481 = vmatpush3.msra.mxu1 %v3456_v55 }
 0x15b   :  { %2447 = vmatprep.subr.mxu0 %v3460_v56  ;;  %2482 = vmatprep.subr.mxu1 %v3462_v57 }
 0x15c   :  { %2448 = vmatpush3.msra.mxu0 %v3466_v58  ;;  %2483 = vmatpush3.msra.mxu1 %v3468_v59 }
 0x15d   :  { %2449 = vmatprep.subr.mxu0 %v3472_v60  ;;  %2484 = vmatprep.subr.mxu1 %v3474_v61 }
 0x15e   :  { %2450 = vmatpush3.msra.mxu0 %v3478_v62  ;;  %2485 = vmatpush3.msra.mxu1 %v3480_v63 }
 0x15f   :  { %2451 = vmatprep.subr.mxu0 %v4889_v23  ;;  %2486 = vmatprep.subr.mxu1 %v4890_v1 }
 0x160   :  { %2452 = vmatpush3.msra.mxu0 %v4893_v20  ;;  %2487 = vmatpush3.msra.mxu1 %v4894_v9  ;;  %v4933_v20 = vld [vmem:[#allocation28_spill] sm:$0xff] }
 0x161   :  { %2453 = vmatprep.subr.mxu0 %v4896_v4  ;;  %2488 = vmatprep.subr.mxu1 %v4925_v8  ;;  %v870_v4 = vmul.f32 %v4931_v16, %v4908_v10  ;;  %v4934_v8 = vld [vmem:[#allocation30_spill] sm:$0xff] }
 0x162   :  { %2454 = vmatpush3.msra.mxu0 %v4926_v19  ;;  %2489 = vmatpush3.msra.mxu1 %v4927_v21  ;;  %v4935_v21 = vld [vmem:[#allocation32_spill] sm:$0xff] }
 0x163   :  { %2455 = vmatprep.subr.mxu0 %v4928_v3  ;;  %2490 = vmatprep.subr.mxu1 %v4929_v2  ;;  %v4936_v2 = vld [vmem:[#allocation34_spill] sm:$0xff]  ;;  %v874_v16 = vadd.f32 %v870_v4, %v3577_v12 }
 0x164   :  { %2456 = vmatpush3.msra.mxu0 %v4932_v17  ;;  %2491 = vmatpush3.msra.mxu1 %v4933_v20  ;;  %v4937_v17 = vld [vmem:[#allocation35_spill] sm:$0xff]  ;;  %v4938_v20 = vld [vmem:[#allocation36_spill] sm:$0xff] }
 0x165   :  { %2457 = vmatprep.subr.mxu0 %v4910_v13  ;;  %2492 = vmatprep.subr.mxu1 %v4934_v8  ;;  %v4939_v8 = vld [vmem:[#allocation47_spill] sm:$0xff]  ;;  %v4940_v13 = vld [vmem:[#allocation48_spill] sm:$0xff]  ;;  %v878_v4 = vmax.f32 %v874_v16, 0.0 }
 0x166   :  { %2458 = vmatpush3.msra.mxu0 %v4913_v24  ;;  %2493 = vmatpush3.msra.mxu1 %v4935_v21  ;;  %v720_v24 = vmax.f32 %v4939_v8, 0.0  ;;  %v722_v21 = vmax.f32 %v4940_v13, 0.0  ;;  %v4942_v13 = vld [vmem:[#allocation21_spill] sm:$0xff]  ;;  %v4943_v8 = vld [vmem:[#allocation22_spill] sm:$0xff]  ;;  %v4946_v16 = vld [vmem:[#allocation43_spill] sm:$0xff] }
 0x167   :  { %2459 = vmatprep.subr.mxu0 %v4915_v18  ;;  %2494 = vmatprep.subr.mxu1 %v4936_v2 }
 0x168   :  { %2460 = vmatpush3.msra.mxu0 %v4937_v17  ;;  %2495 = vmatpush3.msra.mxu1 %v4938_v20 }
 0x169   :  { %2461 = vmatprep.subr.mxu0 %v4919_v7  ;;  %2496 = vmatprep.subr.mxu1 %v4920_v25 }
 0x16a   :  { %2462 = vmatpush3.msra.mxu0 %v4921_v14  ;;  %2497 = vmatpush3.msra.mxu1 %v4922_v6 }
 0x16b   :  { %789 = vmatmul.mubr.f32.vlgmr.msra.gmra.mxu0 %v720_v24  ;;  %859 = vmatmul.mubr.f32.vlgmr.msra.gmra.mxu1 %v722_v21  ;;  %v4941_v24 = vld [vmem:[#allocation19_spill] sm:$0xff]  ;;  %v4944_v21 = vld [vmem:[#allocation24_spill] sm:$0xff] }
 0x16c   :  { %2501 = vmatprep.subr.mxu0 %v4923_v11  ;;  %2536 = vmatprep.subr.mxu1 %v4924_v22 }
 0x16d   :  { %2502 = vmatpush3.msra.mxu0 %v3374_v26  ;;  %943 = vmatprep.mubr.f32.mxu0 %v876_v0  ;;  %v4947_v0 = vld [vmem:[#allocation50_spill] sm:$0xff] }
 0x16e   :  { %2537 = vmatpush3.msra.mxu1 %v3376_v27  ;;  %1013 = vmatprep.mubr.f32.mxu1 %v878_v4  ;;  %v1023_v4 = vmul.f32 %v4947_v0, %v4946_v16 }
 0x16f   :  { %2503 = vmatprep.subr.mxu0 %v3378_v28  ;;  %2538 = vmatprep.subr.mxu1 %v3380_v29 }
 0x170   :  { %2504 = vmatpush3.msra.mxu0 %v3382_v30  ;;  %2539 = vmatpush3.msra.mxu1 %v3384_v31  ;;  %v1027_v16 = vadd.f32 %v1023_v4, %v3575_v15 }
 0x171   :  { %2505 = vmatprep.subr.mxu0 %v3388_v32  ;;  %2540 = vmatprep.subr.mxu1 %v3390_v33 }
 0x172   :  { %2506 = vmatpush3.msra.mxu0 %v3394_v34  ;;  %2541 = vmatpush3.msra.mxu1 %v3396_v35  ;;  %v1031_v4 = vmax.f32 %v1027_v16, 0.0  ;;  %v4061_v16 = vld [vmem:[#allocation9 + $0x1e0] sm:$0xff] }
 0x173   :  { %2507 = vmatprep.subr.mxu0 %v3400_v36  ;;  %2542 = vmatprep.subr.mxu1 %v3402_v37 }
 0x174   :  { %2508 = vmatpush3.msra.mxu0 %v3406_v38  ;;  %2543 = vmatpush3.msra.mxu1 %v3408_v39 }
 0x175   :  { %2509 = vmatprep.subr.mxu0 %v3412_v40  ;;  %2544 = vmatprep.subr.mxu1 %v3414_v41 }
 0x176   :  { %2510 = vmatpush3.msra.mxu0 %v3418_v42  ;;  %2545 = vmatpush3.msra.mxu1 %v3420_v43 }
 0x177   :  { %2511 = vmatprep.subr.mxu0 %v3424_v44  ;;  %2546 = vmatprep.subr.mxu1 %v3426_v45 }
 0x178   :  { %2512 = vmatpush3.msra.mxu0 %v3430_v46  ;;  %2547 = vmatpush3.msra.mxu1 %v3432_v47 }
 0x179   :  { %2513 = vmatprep.subr.mxu0 %v3436_v48  ;;  %2548 = vmatprep.subr.mxu1 %v3438_v49 }
 0x17a   :  { %2514 = vmatpush3.msra.mxu0 %v3442_v50  ;;  %2549 = vmatpush3.msra.mxu1 %v3444_v51 }
 0x17b   :  { %2515 = vmatprep.subr.mxu0 %v3448_v52  ;;  %2550 = vmatprep.subr.mxu1 %v3450_v53 }
 0x17c   :  { %2516 = vmatpush3.msra.mxu0 %v3454_v54  ;;  %2551 = vmatpush3.msra.mxu1 %v3456_v55 }
 0x17d   :  { %2517 = vmatprep.subr.mxu0 %v3460_v56  ;;  %2552 = vmatprep.subr.mxu1 %v3462_v57 }
 0x17e   :  { %2518 = vmatpush3.msra.mxu0 %v3466_v58  ;;  %2553 = vmatpush3.msra.mxu1 %v3468_v59 }
 0x17f   :  { %2519 = vmatprep.subr.mxu0 %v3472_v60  ;;  %2554 = vmatprep.subr.mxu1 %v3474_v61 }
 0x180   :  { %2520 = vmatpush3.msra.mxu0 %v3478_v62  ;;  %2555 = vmatpush3.msra.mxu1 %v3480_v63 }
 0x181   :  { %2521 = vmatprep.subr.mxu0 %v4889_v23  ;;  %2556 = vmatprep.subr.mxu1 %v4890_v1  ;;  %v4948_v1 = vld [vmem:[#allocation27_spill] sm:$0xff] }
 0x182   :  { %2522 = vmatpush3.msra.mxu0 %v4941_v24  ;;  %2557 = vmatpush3.msra.mxu1 %v4894_v9  ;;  %v4949_v24 = vld [vmem:[#allocation28_spill] sm:$0xff]  ;;  %v4950_v9 = vld [vmem:[#allocation29_spill] sm:$0xff] }
 0x183   :  { %2523 = vmatprep.subr.mxu0 %v4942_v13  ;;  %2558 = vmatprep.subr.mxu1 %v4943_v8  ;;  %v1025_v13 = vmul.f32 %v4947_v0, %v4908_v10  ;;  %v4951_v8 = vld [vmem:[#allocation30_spill] sm:$0xff] }
 0x184   :  { %2524 = vmatpush3.msra.mxu0 %v4926_v19  ;;  %2559 = vmatpush3.msra.mxu1 %v4944_v21  ;;  %v4952_v19 = vld [vmem:[#allocation31_spill] sm:$0xff]  ;;  %v4953_v21 = vld [vmem:[#allocation32_spill] sm:$0xff] }
 0x185   :  { %2525 = vmatprep.subr.mxu0 %v4928_v3  ;;  %2560 = vmatprep.subr.mxu1 %v4945_v5  ;;  %v1029_v0 = vadd.f32 %v1025_v13, %v3577_v12 }
 0x186   :  { %2526 = vmatpush3.msra.mxu0 %v4948_v1  ;;  %2561 = vmatpush3.msra.mxu1 %v4949_v24 }
 0x187   :  { %2527 = vmatprep.subr.mxu0 %v4950_v9  ;;  %2562 = vmatprep.subr.mxu1 %v4951_v8  ;;  %v4954_v8 = vld [vmem:[#allocation49_spill] sm:$0xff]  ;;  %v4955_v9 = vld [vmem:[#allocation51_spill] sm:$0xff]  ;;  %v1033_v13 = vmax.f32 %v1029_v0, 0.0 }
 0x188   :  { %2528 = vmatpush3.msra.mxu0 %v4952_v19  ;;  %2563 = vmatpush3.msra.mxu1 %v4953_v21  ;;  %v875_v19 = vmax.f32 %v4954_v8, 0.0  ;;  %v877_v21 = vmax.f32 %v4955_v9, 0.0  ;;  %v4046_v9 = vld [vmem:[#allocation9 + $0xe8] sm:$0xff]  ;;  %v4064_v0 = vld [vmem:[#allocation9 + $0x60] sm:$0xff] }
 0x189   :  { %2529 = vmatprep.subr.mxu0 %v4915_v18  ;;  %2564 = vmatprep.subr.mxu1 %v4936_v2  ;;  %v4055_v8 = vld [vmem:[#allocation9 + $0x168] sm:$0xff] }
 0x18a   :  { %2530 = vmatpush3.msra.mxu0 %v4937_v17  ;;  %2565 = vmatpush3.msra.mxu1 %v4938_v20 }
 0x18b   :  { %2531 = vmatprep.subr.mxu0 %v4919_v7  ;;  %2566 = vmatprep.subr.mxu1 %v4920_v25 }
 0x18c   :  { %2532 = vmatpush3.msra.mxu0 %v4921_v14  ;;  %2567 = vmatpush3.msra.mxu1 %v4922_v6 }
 0x18d   :  { %944 = vmatmul.mubr.f32.vlgmr.msra.gmra.mxu0 %v875_v19  ;;  %1014 = vmatmul.mubr.f32.vlgmr.msra.gmra.mxu1 %v877_v21  ;;  %v4052_v19 = vld [vmem:[#allocation9 + $0x68] sm:$0xff]  ;;  %v4058_v21 = vld [vmem:[#allocation9 + $0xe0] sm:$0xff] }
 0x18e   :  { %2571 = vmatprep.subr.mxu0 %v4923_v11  ;;  %2606 = vmatprep.subr.mxu1 %v4924_v22  ;;  %v4043_v22 = vld [vmem:[#allocation9 + $0x170] sm:$0xff]  ;;  %v4049_v11 = vld [vmem:[#allocation9 + $0x1e8] sm:$0xff] }
 0x18f   :  { %2572 = vmatpush3.msra.mxu0 %v3374_v26  ;;  %1098 = vmatprep.mubr.f32.mxu0 %v1031_v4  ;;  %v4956_v26 = vld [vmem:[#allocation18_spill] sm:$0xff]  ;;  %v4067_v4 = vld [vmem:[#allocation9 + $0x160] sm:$0xff] }
 0x190   :  { %2607 = vmatpush3.msra.mxu1 %v3376_v27  ;;  %1168 = vmatprep.mubr.f32.mxu1 %v1033_v13  ;;  %v4957_v27 = vld [vmem:[#allocation19_spill] sm:$0xff]  ;;  %v4070_v13 = vld [vmem:[#allocation9 + $0xd8] sm:$0xff] }
 0x191   :  { %2573 = vmatprep.subr.mxu0 %v3378_v28  ;;  %2608 = vmatprep.subr.mxu1 %v3380_v29  ;;  %v4958_v28 = vld [vmem:[#allocation20_spill] sm:$0xff]  ;;  %v4959_v29 = vld [vmem:[#allocation21_spill] sm:$0xff] }
 0x192   :  { %2574 = vmatpush3.msra.mxu0 %v3382_v30  ;;  %2609 = vmatpush3.msra.mxu1 %v3384_v31  ;;  %v4960_v30 = vld [vmem:[#allocation22_spill] sm:$0xff]  ;;  %v4961_v31 = vld [vmem:[#allocation23_spill] sm:$0xff] }
 0x193   :  { %2575 = vmatprep.subr.mxu0 %v3388_v32  ;;  %2610 = vmatprep.subr.mxu1 %v3390_v33  ;;  %v4962_v32 = vld [vmem:[#allocation24_spill] sm:$0xff]  ;;  %v4963_v33 = vld [vmem:[#allocation43_spill] sm:$0xff] }
 0x194   :  { %2576 = vmatpush3.msra.mxu0 %v3394_v34  ;;  %2611 = vmatpush3.msra.mxu1 %v3396_v35  ;;  %v4964_v34 = vld [vmem:[#allocation52_spill] sm:$0xff] }
 0x195   :  { %2577 = vmatprep.subr.mxu0 %v3400_v36  ;;  %2612 = vmatprep.subr.mxu1 %v3402_v37  ;;  %v1178_v35 = vmul.f32 %v4964_v34, %v4963_v33  ;;  %v1180_v36 = vmul.f32 %v4964_v34, %v4908_v10  ;;  %v4965_v37 = vld [vmem:[#allocation29_spill] sm:$0xff]  ;;  %v4073_v34 = vld [vmem:[#allocation9 + $0x1d8] sm:$0xff] }
 0x196   :  { %2578 = vmatpush3.msra.mxu0 %v3406_v38  ;;  %2613 = vmatpush3.msra.mxu1 %v3408_v39  ;;  %v4966_v38 = vld [vmem:[#allocation30_spill] sm:$0xff]  ;;  %v4967_v39 = vld [vmem:[#allocation31_spill] sm:$0xff] }
 0x197   :  { %2579 = vmatprep.subr.mxu0 %v3412_v40  ;;  %2614 = vmatprep.subr.mxu1 %v3414_v41  ;;  %v4968_v40 = vld [vmem:[#allocation32_spill] sm:$0xff]  ;;  %v1182_v41 = vadd.f32 %v1178_v35, %v3575_v15  ;;  %v4076_v35 = vld [vmem:[#allocation9 + $0x58] sm:$0xff] }
 0x198   :  { %2580 = vmatpush3.msra.mxu0 %v3418_v42  ;;  %2615 = vmatpush3.msra.mxu1 %v3420_v43  ;;  %v1184_v42 = vadd.f32 %v1180_v36, %v3577_v12  ;;  %v4969_v43 = vld [vmem:[#allocation53_spill] sm:$0xff]  ;;  %v4079_v36 = vld [vmem:[#allocation9 + $0x158] sm:$0xff] }
 0x199   :  { %2581 = vmatprep.subr.mxu0 %v3424_v44  ;;  %2616 = vmatprep.subr.mxu1 %v3426_v45  ;;  %v1030_v44 = vmax.f32 %v4969_v43, 0.0  ;;  %v4970_v45 = vld [vmem:[#allocation54_spill] sm:$0xff]  ;;  %v4088_v43 = vld [vmem:[#allocation9 + $0x50] sm:$0xff] }
 0x19a   :  { %2582 = vmatpush3.msra.mxu0 %v3430_v46  ;;  %2617 = vmatpush3.msra.mxu1 %v3432_v47  ;;  %v1032_v46 = vmax.f32 %v4970_v45, 0.0  ;;  %v1186_v47 = vmax.f32 %v1182_v41, 0.0  ;;  %v4082_v41 = vld [vmem:[#allocation9 + $0xd0] sm:$0xff]  ;;  %4971 = vst [vmem:[#allocation33_spill] sm:$0xff] %v4088_v43  ;;  %v4094_v45 = vld [vmem:[#allocation9 + $0xc8] sm:$0xff] }
 0x19b   :  { %2583 = vmatprep.subr.mxu0 %v3436_v48  ;;  %2618 = vmatprep.subr.mxu1 %v3438_v49  ;;  %v4022_v48 = vld [vmem:[#allocation9 + $0xf8] sm:$0xff]  ;;  %4973 = vst [vmem:[#allocation38_spill] sm:$0xff] %v4094_v45 }
 0x19c   :  { %2584 = vmatpush3.msra.mxu0 %v3442_v50  ;;  %2619 = vmatpush3.msra.mxu1 %v3444_v51  ;;  %v4025_v49 = vld [vmem:[#allocation9 + $0x1f8] sm:$0xff]  ;;  %v1188_v50 = vmax.f32 %v1184_v42, 0.0  ;;  %v4085_v42 = vld [vmem:[#allocation9 + $0x1d0] sm:$0xff] }
 0x19d   :  { %2585 = vmatprep.subr.mxu0 %v3448_v52  ;;  %2620 = vmatprep.subr.mxu1 %v3450_v53  ;;  %v4028_v51 = vld [vmem:[#allocation9 + $0x78] sm:$0xff]  ;;  %v4034_v53 = vld [vmem:[#allocation9 + $0xf0] sm:$0xff] }
 0x19e   :  { %2586 = vmatpush3.msra.mxu0 %v3454_v54  ;;  %2621 = vmatpush3.msra.mxu1 %v3456_v55  ;;  %v4031_v52 = vld [vmem:[#allocation9 + $0x178] sm:$0xff]  ;;  %v4037_v54 = vld [vmem:[#allocation9 + $0x1f0] sm:$0xff] }
 0x19f   :  { %2587 = vmatprep.subr.mxu0 %v3460_v56  ;;  %2622 = vmatprep.subr.mxu1 %v3462_v57  ;;  %v4040_v55 = vld [vmem:[#allocation9 + $0x70] sm:$0xff] }
 0x1a0   :  { %2588 = vmatpush3.msra.mxu0 %v3466_v58  ;;  %2623 = vmatpush3.msra.mxu1 %v3468_v59 }
 0x1a1   :  { %2589 = vmatprep.subr.mxu0 %v3472_v60  ;;  %2624 = vmatprep.subr.mxu1 %v3474_v61 }
 0x1a2   :  { %2590 = vmatpush3.msra.mxu0 %v3478_v62  ;;  %2625 = vmatpush3.msra.mxu1 %v3480_v63 }
 0x1a3   :  { %2591 = vmatprep.subr.mxu0 %v4889_v23  ;;  %2626 = vmatprep.subr.mxu1 %v4956_v26 }
 0x1a4   :  { %2592 = vmatpush3.msra.mxu0 %v4957_v27  ;;  %2627 = vmatpush3.msra.mxu1 %v4958_v28 }
 0x1a5   :  { %2593 = vmatprep.subr.mxu0 %v4959_v29  ;;  %2628 = vmatprep.subr.mxu1 %v4960_v30 }
 0x1a6   :  { %2594 = vmatpush3.msra.mxu0 %v4961_v31  ;;  %2629 = vmatpush3.msra.mxu1 %v4962_v32 }
 0x1a7   :  { %2595 = vmatprep.subr.mxu0 %v4928_v3  ;;  %2630 = vmatprep.subr.mxu1 %v4945_v5 }
 0x1a8   :  { %2596 = vmatpush3.msra.mxu0 %v4948_v1  ;;  %2631 = vmatpush3.msra.mxu1 %v4949_v24 }
 0x1a9   :  { %2597 = vmatprep.subr.mxu0 %v4965_v37  ;;  %2632 = vmatprep.subr.mxu1 %v4966_v38 }
 0x1aa   :  { %2598 = vmatpush3.msra.mxu0 %v4967_v39  ;;  %2633 = vmatpush3.msra.mxu1 %v4968_v40 }
 0x1ab   :  { %2599 = vmatprep.subr.mxu0 %v4915_v18  ;;  %2634 = vmatprep.subr.mxu1 %v4936_v2 }
 0x1ac   :  { %2600 = vmatpush3.msra.mxu0 %v4937_v17  ;;  %2635 = vmatpush3.msra.mxu1 %v4938_v20 }
 0x1ad   :  { %2601 = vmatprep.subr.mxu0 %v4919_v7  ;;  %2636 = vmatprep.subr.mxu1 %v4920_v25 }
 0x1ae   :  { %2602 = vmatpush3.msra.mxu0 %v4921_v14  ;;  %2637 = vmatpush3.msra.mxu1 %v4922_v6 }
 0x1af   :  { %1099 = vmatmul.mubr.f32.vlgmr.msra.gmra.mxu0 %v1030_v44  ;;  %1169 = vmatmul.mubr.f32.vlgmr.msra.gmra.mxu1 %v1032_v46  ;;  %v4091_v44 = vld [vmem:[#allocation9 + $0x150] sm:$0xff]  ;;  %v4097_v46 = vld [vmem:[#allocation9 + $0x1c8] sm:$0xff] }
 0x1b0   :  { %2641 = vmatprep.subr.mxu0 %v4022_v48  ;;  %2676 = vmatprep.subr.mxu1 %v4025_v49  ;;  %4972 = vst [vmem:[#allocation37_spill] sm:$0xff] %v4091_v44  ;;  %4974 = vst [vmem:[#allocation39_spill] sm:$0xff] %v4097_v46 }
 0x1b1   :  { %2642 = vmatpush3.msra.mxu0 %v4028_v51  ;;  %1253 = vmatprep.mubr.f32.mxu0 %v1186_v47  ;;  %v4100_v47 = vld [vmem:[#allocation9 + $0x48] sm:$0xff] }
 0x1b2   :  { %2677 = vmatpush3.msra.mxu1 %v4031_v52  ;;  %1323 = vmatprep.mubr.f32.mxu1 %v1188_v50  ;;  %v4103_v50 = vld [vmem:[#allocation9 + $0x148] sm:$0xff] }
 0x1b3   :  { %2643 = vmatprep.subr.mxu0 %v4034_v53  ;;  %2678 = vmatprep.subr.mxu1 %v4037_v54 }
 0x1b4   :  { %2644 = vmatpush3.msra.mxu0 %v4040_v55  ;;  %2679 = vmatpush3.msra.mxu1 %v4043_v22 }
 0x1b5   :  { %2645 = vmatprep.subr.mxu0 %v4046_v9  ;;  %2680 = vmatprep.subr.mxu1 %v4049_v11 }
 0x1b6   :  { %2646 = vmatpush3.msra.mxu0 %v4052_v19  ;;  %2681 = vmatpush3.msra.mxu1 %v4055_v8 }
 0x1b7   :  { %2647 = vmatprep.subr.mxu0 %v4058_v21  ;;  %2682 = vmatprep.subr.mxu1 %v4061_v16 }
 0x1b8   :  { %2648 = vmatpush3.msra.mxu0 %v4064_v0  ;;  %2683 = vmatpush3.msra.mxu1 %v4067_v4 }
 0x1b9   :  { %2649 = vmatprep.subr.mxu0 %v4070_v13  ;;  %2684 = vmatprep.subr.mxu1 %v4073_v34 }
 0x1ba   :  { %2650 = vmatpush3.msra.mxu0 %v4076_v35  ;;  %2685 = vmatpush3.msra.mxu1 %v4079_v36 }
 0x1bb   :  { %2651 = vmatprep.subr.mxu0 %v4082_v41  ;;  %2686 = vmatprep.subr.mxu1 %v4085_v42 }
 0x1bc   :  { %2652 = vmatpush3.msra.mxu0 %v4088_v43  ;;  %2687 = vmatpush3.msra.mxu1 %v4091_v44  ;;  %v4106_v43 = vld [vmem:[#allocation9 + $0xc0] sm:$0xff] }
 0x1bd   :  { %2653 = vmatprep.subr.mxu0 %v4094_v45  ;;  %2688 = vmatprep.subr.mxu1 %v4097_v46  ;;  %v4109_v44 = vld [vmem:[#allocation9 + $0x1c0] sm:$0xff] }
 0x1be   :  { %2654 = vmatpush3.msra.mxu0 %v4100_v47  ;;  %2689 = vmatpush3.msra.mxu1 %v4103_v50  ;;  %4975 = vst [vmem:[#allocation40_spill] sm:$0xff] %v4109_v44  ;;  %v4112_v45 = vld [vmem:[#allocation9 + $0x40] sm:$0xff] }
 0x1bf   :  { %2655 = vmatprep.subr.mxu0 %v4106_v43  ;;  %2690 = vmatprep.subr.mxu1 %v4109_v44  ;;  %4976 = vst [vmem:[#allocation15_spill] sm:$0xff] %v4112_v45  ;;  %v4115_v46 = vld [vmem:[#allocation9 + $0x140] sm:$0xff] }
 0x1c0   :  { %2656 = vmatpush3.msra.mxu0 %v4112_v45  ;;  %4977 = vst [vmem:[#allocation16_spill] sm:$0xff] %v4115_v46  ;;  %2691 = vmatpush3.msra.mxu1 %v4115_v46 }
 0x1c1   :  { %2657 = vmatprep.subr.mxu0 %v3460_v56  ;;  %2692 = vmatprep.subr.mxu1 %v3462_v57  ;;  %v4978_v56 = vld [vmem:[#allocation55_spill] sm:$0xff] }
 0x1c2   :  { %2658 = vmatpush3.msra.mxu0 %v3466_v58  ;;  %2693 = vmatpush3.msra.mxu1 %v3468_v59  ;;  %v1333_v57 = vmul.f32 %v4978_v56, %v4963_v33  ;;  %v1335_v58 = vmul.f32 %v4978_v56, %v4908_v10  ;;  %v4235_v56 = vld [vmem:[#allocation9 + $0x120] sm:$0xff] }
 0x1c3   :  { %2659 = vmatprep.subr.mxu0 %v3472_v60  ;;  %2694 = vmatprep.subr.mxu1 %v3474_v61  ;;  %v4979_v61 = vld [vmem:[#allocation56_spill] sm:$0xff]  ;;  %5000 = vst [vmem:[#allocation20_spill] sm:$0xff] %v4235_v56 }
 0x1c4   :  { %2660 = vmatpush3.msra.mxu0 %v3478_v62  ;;  %2695 = vmatpush3.msra.mxu1 %v3480_v63  ;;  %v1337_v59 = vadd.f32 %v1333_v57, %v3575_v15  ;;  %v1339_v60 = vadd.f32 %v1335_v58, %v3577_v12  ;;  %v1185_v62 = vmax.f32 %v4979_v61, 0.0  ;;  %v4980_v63 = vld [vmem:[#allocation57_spill] sm:$0xff]  ;;  %v4241_v57 = vld [vmem:[%s4676_s5] ss:$0 sm:$0xff]  ;;  %v4246_v61 = vld [vmem:[#allocation9 + $0x198] sm:$0xff]  ;;  %s3314_s5 = smov [#allocation10]  }
 0x1c5   :  { %2661 = vmatprep.subr.mxu0 %v4889_v23  ;;  %2696 = vmatprep.subr.mxu1 %v4956_v26  ;;  %v4981_v23 = vld [vmem:[#allocation33_spill] sm:$0xff]  ;;  %5002 = vst [vmem:[#allocation22_spill] sm:$0xff] %v4246_v61  ;;  %s2265_s10 = sshll.u32 %s3314_s5, 4  ;;  %s2266_s10 = int_to_ptr.vmem [resolvable:$true] %s2265_s10 }
 0x1c6   :  { %2662 = vmatpush3.msra.mxu0 %v4957_v27  ;;  %2697 = vmatpush3.msra.mxu1 %v4958_v28  ;;  %v4208_v26 = vld [vmem:[#allocation9 + $0x30] sm:$0xff]  ;;  %v4214_v28 = vld [vmem:[#allocation9 + $0xa8] sm:$0xff]  ;;  %s3277_s2 = scalar_lea.vmem %s2266_s10, 1536  ;;  %p3282_p7 = scmp.lt.s32.totalorder %s2266_s10, %s2266_s10 }
 0x1c7   :  { %2663 = vmatprep.subr.mxu0 %v4959_v29  ;;  %2698 = vmatprep.subr.mxu1 %v4960_v30  ;;  %4991 = vst [vmem:[#allocation48_spill] sm:$0xff] %v4208_v26  ;;  %v4211_v27 = vld [vmem:[#allocation9 + $0x130] sm:$0xff]  ;;  %4993 = vst [vmem:[#allocation50_spill] sm:$0xff] %v4214_v28  ;;  %v4217_v29 = vld [vmem:[#allocation9 + $0x1a8] sm:$0xff]  ;;  %p3278_p6 = scmp.ne.s32.totalorder %s2266_s10, %s3277_s2  ;;  %p3283_p8 = scmp.lt.s32.totalorder %s3277_s2, %s3277_s2 }
 0x1c8   :  { %2664 = vmatpush3.msra.mxu0 %v4961_v31  ;;  %2699 = vmatpush3.msra.mxu1 %v4962_v32  ;;  %4992 = vst [vmem:[#allocation26_spill] sm:$0xff] %v4211_v27  ;;  %4994 = vst [vmem:[#allocation27_spill] sm:$0xff] %v4217_v29  ;;  %v4220_v30 = vld [vmem:[#allocation9 + $0x28] sm:$0xff] }
 0x1c9   :  { %2665 = vmatprep.subr.mxu0 %v4928_v3  ;;  %2700 = vmatprep.subr.mxu1 %v4945_v5  ;;  %v4193_v3 = vld [vmem:[#allocation9 + $0x1b8] sm:$0xff]  ;;  %v4205_v5 = vld [vmem:[#allocation9 + $0x1b0] sm:$0xff]  ;;  %4995 = vst [vmem:[#allocation28_spill] sm:$0xff] %v4220_v30  ;;  %v4223_v31 = vld [vmem:[#allocation9 + $0x128] sm:$0xff]  ;;  %p3284_p9 = por %p3283_p8, %p3282_p7 }
 0x1ca   :  { %2666 = vmatpush3.msra.mxu0 %v4948_v1  ;;  %2701 = vmatpush3.msra.mxu1 %v4949_v24  ;;  %v1187_v1 = vmax.f32 %v4980_v63, 0.0  ;;  %4986 = vst [vmem:[#allocation46_spill] sm:$0xff] %v4193_v3  ;;  %v4202_v24 = vld [vmem:[#allocation9 + $0xb0] sm:$0xff]  ;;  %4990 = vst [vmem:[#allocation47_spill] sm:$0xff] %v4205_v5 }
 0x1cb   :  { %2667 = vmatprep.subr.mxu0 %v4965_v37  ;;  %2702 = vmatprep.subr.mxu1 %v4966_v38  ;;  %4989 = vst [vmem:[#allocation36_spill] sm:$0xff] %v4202_v24  ;;  %4996 = vst [vmem:[#allocation49_spill] sm:$0xff] %v4223_v31  ;;  %v4226_v38 = vld [vmem:[#allocation9 + $0xa0] sm:$0xff]  ;;  %p3285_p10 = pnand %p3284_p9, %p3278_p6 }
 0x1cc   :  { %2668 = vmatpush3.msra.mxu0 %v4967_v39  ;;  %2703 = vmatpush3.msra.mxu1 %v4968_v40  ;;  %4997 = vst [vmem:[#allocation51_spill] sm:$0xff] %v4226_v38  ;;  %v4229_v39 = vld [vmem:[#allocation9 + $0x1a0] sm:$0xff] }
 0x1cd   :  { %2669 = vmatprep.subr.mxu0 %v4915_v18  ;;  %2704 = vmatprep.subr.mxu1 %v4936_v2  ;;  %v1341_v18 = vmax.f32 %v1337_v59, 0.0  ;;  %v4196_v2 = vld [vmem:[#allocation9 + $0x38] sm:$0xff]  ;;  %4998 = vst [vmem:[#allocation18_spill] sm:$0xff] %v4229_v39  ;;  %v4232_v40 = vld [vmem:[#allocation9 + $0x20] sm:$0xff] }
 0x1ce   :  { %2670 = vmatpush3.msra.mxu0 %v4937_v17  ;;  %2705 = vmatpush3.msra.mxu1 %v4938_v20  ;;  %v1343_v20 = vmax.f32 %v1339_v60, 0.0  ;;  %4987 = vst [vmem:[#allocation34_spill] sm:$0xff] %v4196_v2  ;;  %v4199_v17 = vld [vmem:[#allocation9 + $0x138] sm:$0xff]  ;;  %4999 = vst [vmem:[#allocation19_spill] sm:$0xff] %v4232_v40 }
 0x1cf   :  { %2671 = vmatprep.subr.mxu0 %v4919_v7  ;;  %2706 = vmatprep.subr.mxu1 %v4920_v25  ;;  %v4984_v7 = vld [vmem:[#allocation39_spill] sm:$0xff]  ;;  %v4190_v25 = vld [vmem:[#allocation9 + $0xb8] sm:$0xff]  ;;  %4988 = vst [vmem:[#allocation35_spill] sm:$0xff] %v4199_v17 }
 0x1d0   :  { %2672 = vmatpush3.msra.mxu0 %v4921_v14  ;;  %2707 = vmatpush3.msra.mxu1 %v4922_v6  ;;  %v4982_v6 = vld [vmem:[#allocation37_spill] sm:$0xff]  ;;  %v4983_v14 = vld [vmem:[#allocation38_spill] sm:$0xff]  ;;  %4985 = vst [vmem:[#allocation25_spill] sm:$0xff] %v4190_v25 }
 0x1d1   :  { %1254 = vmatmul.mubr.f32.vlgmr.msra.gmra.mxu0 %v1185_v62  ;;  %1324 = vmatmul.mubr.f32.vlgmr.msra.gmra.mxu1 %v1187_v1  ;;  %v4243_v60 = vld [vmem:[#allocation9 + $0x98] sm:$0xff] }
 0x1d2   :  { %2711 = vmatprep.subr.mxu0 %v4022_v48  ;;  %2746 = vmatprep.subr.mxu1 %v4025_v49  ;;  %5001 = vst [vmem:[#allocation21_spill] sm:$0xff] %v4243_v60  ;;  %v5003_v62 = vld [vmem:[#allocation58_spill] sm:$0xff] }
 0x1d3   :  { %2712 = vmatpush3.msra.mxu0 %v4028_v51  ;;  %1408 = vmatprep.mubr.f32.mxu0 %v1341_v18  ;;  %v1488_v63 = vmul.f32 %v5003_v62, %v4963_v33  ;;  %v4251_v18 = vld [vmem:[#allocation9 + $0x18] sm:$0xff]  ;;  %v4266_v33 = vld [vmem:[#allocation9 + $0x10] sm:$0xff] }
 0x1d4   :  { %2747 = vmatpush3.msra.mxu1 %v4031_v52  ;;  %1478 = vmatprep.mubr.f32.mxu1 %v1343_v20  ;;  %5004 = vst [vmem:[#allocation23_spill] sm:$0xff] %v4251_v18  ;;  %v4254_v20 = vld [vmem:[#allocation9 + $0x118] sm:$0xff]  ;;  %5008 = vst [vmem:[#allocation30_spill] sm:$0xff] %v4266_v33 }
 0x1d5   :  { %2713 = vmatprep.subr.mxu0 %v4034_v53  ;;  %2748 = vmatprep.subr.mxu1 %v4037_v54  ;;  %5005 = vst [vmem:[#allocation24_spill] sm:$0xff] %v4254_v20 }
 0x1d6   :  { %2714 = vmatpush3.msra.mxu0 %v4040_v55  ;;  %2749 = vmatpush3.msra.mxu1 %v4043_v22 }
 0x1d7   :  { %2715 = vmatprep.subr.mxu0 %v4046_v9  ;;  %2750 = vmatprep.subr.mxu1 %v4049_v11 }
 0x1d8   :  { %2716 = vmatpush3.msra.mxu0 %v4052_v19  ;;  %2751 = vmatpush3.msra.mxu1 %v4055_v8 }
 0x1d9   :  { %2717 = vmatprep.subr.mxu0 %v4058_v21  ;;  %2752 = vmatprep.subr.mxu1 %v4061_v16 }
 0x1da   :  { %2718 = vmatpush3.msra.mxu0 %v4064_v0  ;;  %2753 = vmatpush3.msra.mxu1 %v4067_v4 }
 0x1db   :  { %2719 = vmatprep.subr.mxu0 %v4070_v13  ;;  %2754 = vmatprep.subr.mxu1 %v4073_v34 }
 0x1dc   :  { %2720 = vmatpush3.msra.mxu0 %v4076_v35  ;;  %2755 = vmatpush3.msra.mxu1 %v4079_v36 }
 0x1dd   :  { %2721 = vmatprep.subr.mxu0 %v4082_v41  ;;  %2756 = vmatprep.subr.mxu1 %v4085_v42 }
 0x1de   :  { %2722 = vmatpush3.msra.mxu0 %v4981_v23  ;;  %2757 = vmatpush3.msra.mxu1 %v4982_v6 }
 0x1df   :  { %2723 = vmatprep.subr.mxu0 %v4983_v14  ;;  %2758 = vmatprep.subr.mxu1 %v4984_v7 }
 0x1e0   :  { %2724 = vmatpush3.msra.mxu0 %v4100_v47  ;;  %2759 = vmatpush3.msra.mxu1 %v4103_v50 }
 0x1e1   :  { %2725 = vmatprep.subr.mxu0 %v4106_v43  ;;  %2760 = vmatprep.subr.mxu1 %v4109_v44 }
 0x1e2   :  { %2726 = vmatpush3.msra.mxu0 %v4112_v45  ;;  %2761 = vmatpush3.msra.mxu1 %v4115_v46 }
 0x1e3   :  { %2727 = vmatprep.subr.mxu0 %v4190_v25  ;;  %2762 = vmatprep.subr.mxu1 %v4193_v3 }
 0x1e4   :  { %2728 = vmatpush3.msra.mxu0 %v4196_v2  ;;  %2763 = vmatpush3.msra.mxu1 %v4199_v17 }
 0x1e5   :  { %2729 = vmatprep.subr.mxu0 %v4202_v24  ;;  %2764 = vmatprep.subr.mxu1 %v4205_v5 }
 0x1e6   :  { %2730 = vmatpush3.msra.mxu0 %v4208_v26  ;;  %2765 = vmatpush3.msra.mxu1 %v4211_v27 }
 0x1e7   :  { %2731 = vmatprep.subr.mxu0 %v4214_v28  ;;  %2766 = vmatprep.subr.mxu1 %v4217_v29 }
 0x1e8   :  { %2732 = vmatpush3.msra.mxu0 %v4220_v30  ;;  %2767 = vmatpush3.msra.mxu1 %v4223_v31  ;;  %v2323_v32 = vpop.f32.mrf.mxu0  ;;  %v2358_v37 = vpop.f32.mrf.mxu1 }
 0x1e9   :  { %2733 = vmatprep.subr.mxu0 %v4226_v38  ;;  %2768 = vmatprep.subr.mxu1 %v4229_v39 }
 0x1ea   :  { %2734 = vmatpush3.msra.mxu0 %v4232_v40  ;;  %2769 = vmatpush3.msra.mxu1 %v4235_v56  ;;  %v2324_v58 = vpop.f32.mrf.mxu0  ;;  %v2359_v59 = vpop.f32.mrf.mxu1  ;;  %v1490_v56 = vmul.f32 %v5003_v62, %v4908_v10  ;;  %v4272_v62 = vld [vmem:[#allocation9 + $0x88] sm:$0xff] }
 0x1eb   :  { %2735 = vmatprep.subr.mxu0 %v4243_v60  ;;  %2770 = vmatprep.subr.mxu1 %v4246_v61  ;;  %v2325_v1 = vadd.f32 %v2324_v58, %v2323_v32  ;;  %v4259_v60 = vld [vmem:[#allocation9 + $0x90] sm:$0xff]  ;;  %v2360_v58 = vadd.f32 %v2359_v59, %v2358_v37  ;;  %5010 = vst [vmem:[#allocation32_spill] sm:$0xff] %v4272_v62  ;;  %v4279_v37 = vld [vmem:[#allocation9 + $0x8] sm:$0xff] }
 0x1ec   :  { %2736 = vmatpush3.msra.mxu0 %v4251_v18  ;;  %2771 = vmatpush3.msra.mxu1 %v4254_v20  ;;  %5006 = vst [vmem:[#allocation52_spill] sm:$0xff] %v4259_v60  ;;  %v4262_v61 = vld [vmem:[#allocation9 + $0x190] sm:$0xff]  ;;  %5011 = vst [vmem:[#allocation53_spill] sm:$0xff] %v4279_v37  ;;  %v4282_v59 = vld [vmem:[#allocation9 + $0x108] sm:$0xff] }
 0x1ed   :  { %2737 = vmatprep.subr.mxu0 %v4259_v60  ;;  %5007 = vst [vmem:[#allocation29_spill] sm:$0xff] %v4262_v61  ;;  %2772 = vmatprep.subr.mxu1 %v4262_v61  ;;  %v481_v32 = vadd.f32 %v2325_v1, %v4241_v57  ;;  %v4269_v18 = vld [vmem:[#allocation9 + $0x110] sm:$0xff]  ;;  %v4275_v60 = vld [vmem:[#allocation9 + $0x188] sm:$0xff]  ;;  %v1492_v61 = vadd.f32 %v1488_v63, %v3575_v15  ;;  %5012 = vst [vmem:[#allocation54_spill] sm:$0xff] %v4282_v59 }
 0x1ee   :  { %2738 = vmatpush3.msra.mxu0 %v4266_v33  ;;  %5009 = vst [vmem:[#allocation31_spill] sm:$0xff] %v4269_v18  ;;  %2773 = vmatpush3.msra.mxu1 %v4269_v18  ;;  %v1494_v18 = vadd.f32 %v1490_v56, %v3577_v12  ;;  %v4286_v33 = vld [vmem:[#allocation9 + $0x80] sm:$0xff] }
 0x1ef   :  { %2739 = vmatprep.subr.mxu0 %v4272_v62  ;;  %2774 = vmatprep.subr.mxu1 %v4275_v60  ;;  %v551_v1 = vadd.f32 %v2360_v58, %v481_v32  ;;  %v4289_v62 = vld [vmem:[#allocation9 + $0x180] sm:$0xff]  ;;  %v5015_v58 = vld [vmem:[#allocation60_spill] sm:$0xff]  ;;  %v1496_v56 = vmax.f32 %v1492_v61, 0.0 }
 0x1f0   :  { %2740 = vmatpush3.msra.mxu0 %v4279_v37  ;;  %2775 = vmatpush3.msra.mxu1 %v4282_v59  ;;  %5013 = vst [vmem:[#allocation55_spill] sm:$0xff] %v4289_v62  ;;  %v5014_v63 = vld [vmem:[#allocation59_spill] sm:$0xff]  ;;  %v1342_v15 = vmax.f32 %v5015_v58, 0.0  ;;  %v5018_v58 = vld [vmem:[#allocation22_spill] sm:$0xff] }
 0x1f1   :  { %2741 = vmatprep.subr.mxu0 %v4286_v33  ;;  %2776 = vmatprep.subr.mxu1 %v4289_v62  ;;  %v1340_v32 = vmax.f32 %v5014_v63, 0.0  ;;  %554 = vst [vmem:[#allocation10] sm:$0xff] %v551_v1  ;;  %v4294_v37 = vld [vmem:[#allocation9] sm:$0xff]  ;;  %v1498_v62 = vmax.f32 %v1494_v18, 0.0  ;;  %v5016_v1 = vld [vmem:[#allocation20_spill] sm:$0xff] }
 0x1f2   :  { %2742 = vmatpush3.msra.mxu0 %v4294_v37  ;;  %v4297_v59 = vld [vmem:[#allocation9 + $0x100] sm:$0xff] }
 0x1f3   :  { %2777 = vmatpush3.msra.mxu1 %v4297_v59  ;;  %1409 = vmatmul.mubr.f32.vlgmr.msra.gmra.mxu0 %v1340_v32  ;;  %v5017_v32 = vld [vmem:[#allocation21_spill] sm:$0xff] }
 0x1f4   :  { %1479 = vmatmul.mubr.f32.vlgmr.msra.gmra.mxu1 %v1342_v15  ;;  %2781 = vmatprep.subr.mxu0 %v4022_v48 }
 0x1f5   :  { %2816 = vmatprep.subr.mxu1 %v4025_v49  ;;  %2782 = vmatpush3.msra.mxu0 %v4028_v51 }
 0x1f6   :  { %1563 = vmatprep.mubr.f32.mxu0 %v1496_v56  ;;  %2817 = vmatpush3.msra.mxu1 %v4031_v52  ;;  %v5019_v56 = vld [vmem:[#allocation43_spill] sm:$0xff] }
 0x1f7   :  { %1633 = vmatprep.mubr.f32.mxu1 %v1498_v62  ;;  %2783 = vmatprep.subr.mxu0 %v4034_v53 }
 0x1f8   :  { %2818 = vmatprep.subr.mxu1 %v4037_v54  ;;  %2784 = vmatpush3.msra.mxu0 %v4040_v55 }
 0x1f9   :  { %2819 = vmatpush3.msra.mxu1 %v4043_v22  ;;  %2785 = vmatprep.subr.mxu0 %v4046_v9 }
 0x1fa   :  { %2820 = vmatprep.subr.mxu1 %v4049_v11  ;;  %2786 = vmatpush3.msra.mxu0 %v4052_v19 }
 0x1fb   :  { %2821 = vmatpush3.msra.mxu1 %v4055_v8  ;;  %2787 = vmatprep.subr.mxu0 %v4058_v21 }
 0x1fc   :  { %2822 = vmatprep.subr.mxu1 %v4061_v16  ;;  %2788 = vmatpush3.msra.mxu0 %v4064_v0 }
 0x1fd   :  { %2823 = vmatpush3.msra.mxu1 %v4067_v4  ;;  %2789 = vmatprep.subr.mxu0 %v4070_v13 }
 0x1fe   :  { %2824 = vmatprep.subr.mxu1 %v4073_v34  ;;  %2790 = vmatpush3.msra.mxu0 %v4076_v35 }
 0x1ff   :  { %2825 = vmatpush3.msra.mxu1 %v4079_v36  ;;  %2791 = vmatprep.subr.mxu0 %v4082_v41 }
 0x200   :  { %2826 = vmatprep.subr.mxu1 %v4085_v42  ;;  %2792 = vmatpush3.msra.mxu0 %v4981_v23 }
 0x201   :  { %2827 = vmatpush3.msra.mxu1 %v4982_v6  ;;  %2793 = vmatprep.subr.mxu0 %v4983_v14 }
 0x202   :  { %2828 = vmatprep.subr.mxu1 %v4984_v7  ;;  %2794 = vmatpush3.msra.mxu0 %v4100_v47 }
 0x203   :  { %2829 = vmatpush3.msra.mxu1 %v4103_v50  ;;  %2795 = vmatprep.subr.mxu0 %v4106_v43 }
 0x204   :  { %2830 = vmatprep.subr.mxu1 %v4109_v44  ;;  %2796 = vmatpush3.msra.mxu0 %v4112_v45 }
 0x205   :  { %2831 = vmatpush3.msra.mxu1 %v4115_v46  ;;  %2797 = vmatprep.subr.mxu0 %v4190_v25 }
 0x206   :  { %2832 = vmatprep.subr.mxu1 %v4193_v3  ;;  %2798 = vmatpush3.msra.mxu0 %v4196_v2 }
 0x207   :  { %2833 = vmatpush3.msra.mxu1 %v4199_v17  ;;  %2799 = vmatprep.subr.mxu0 %v4202_v24 }
 0x208   :  { %2834 = vmatprep.subr.mxu1 %v4205_v5  ;;  %2800 = vmatpush3.msra.mxu0 %v4208_v26 }
 0x209   :  { %2835 = vmatpush3.msra.mxu1 %v4211_v27  ;;  %2801 = vmatprep.subr.mxu0 %v4214_v28  ;;  %v2393_v15 = vpop.f32.mrf.mxu0  ;;  %v2428_v61 = vpop.f32.mrf.mxu1  ;;  %v5021_v28 = vld [vmem:[#allocation23_spill] sm:$0xff] }
 0x20a   :  { %2836 = vmatprep.subr.mxu1 %v4217_v29  ;;  %2802 = vmatpush3.msra.mxu0 %v4220_v30  ;;  %v5020_v29 = vld [vmem:[#allocation61_spill] sm:$0xff] }
 0x20b   :  { %2837 = vmatpush3.msra.mxu1 %v4223_v31  ;;  %2803 = vmatprep.subr.mxu0 %v4226_v38  ;;  %v2394_v18 = vpop.f32.mrf.mxu0  ;;  %v2429_v62 = vpop.f32.mrf.mxu1  ;;  %v1643_v30 = vmul.f32 %v5020_v29, %v5019_v56  ;;  %v5022_v31 = vld [vmem:[#allocation52_spill] sm:$0xff] }
 0x20c   :  { %2838 = vmatprep.subr.mxu1 %v4229_v39  ;;  %2804 = vmatpush3.msra.mxu0 %v4232_v40  ;;  %v2395_v63 = vadd.f32 %v2394_v18, %v2393_v15  ;;  %v1645_v39 = vmul.f32 %v5020_v29, %v4908_v10  ;;  %v2430_v40 = vadd.f32 %v2429_v62, %v2428_v61  ;;  %v5023_v15 = vld [vmem:[#allocation29_spill] sm:$0xff]  ;;  %v5024_v18 = vld [vmem:[#allocation30_spill] sm:$0xff]  ;;  %v5026_v56 = vld [vmem:[#allocation32_spill] sm:$0xff] }
 0x20d   :  { %2839 = vmatpush3.msra.mxu1 %v5016_v1  ;;  %2805 = vmatprep.subr.mxu0 %v5017_v32  ;;  %v5028_v1 = vld [vmem:[#allocation53_spill] sm:$0xff]  ;;  %v5029_v29 = vld [vmem:[#allocation54_spill] sm:$0xff]  ;;  %v5030_v62 = vld [vmem:[#allocation55_spill] sm:$0xff] }
 0x20e   :  { %2840 = vmatprep.subr.mxu1 %v5018_v58  ;;  %2806 = vmatpush3.msra.mxu0 %v5021_v28  ;;  %v636_v38 = vadd.f32 %v2395_v63, %v4241_v57  ;;  %v5025_v58 = vld [vmem:[#allocation31_spill] sm:$0xff]  ;;  %v1649_v61 = vadd.f32 %v1645_v39, %v3577_v12  ;;  %v5031_v63 = vld [vmem:[#allocation62_spill] sm:$0xff] }
 0x20f   :  { %2841 = vmatpush3.msra.mxu1 %v4254_v20  ;;  %2807 = vmatprep.subr.mxu0 %v5022_v31  ;;  %v5027_v20 = vld [vmem:[#allocation42_spill] sm:$0xff] }
 0x210   :  { %2842 = vmatprep.subr.mxu1 %v5023_v15  ;;  %2808 = vmatpush3.msra.mxu0 %v5024_v18  ;;  %v706_v32 = vadd.f32 %v2430_v40, %v636_v38  ;;  %v1647_v28 = vadd.f32 %v1643_v30, %v5027_v20  ;;  %v5032_v38 = vld [vmem:[#allocation63_spill] sm:$0xff]  ;;  %v1653_v39 = vmax.f32 %v1649_v61, 0.0 }
 0x211   :  { %2843 = vmatpush3.msra.mxu1 %v5025_v58  ;;  %2809 = vmatprep.subr.mxu0 %v5026_v56  ;;  %v1495_v58 = vmax.f32 %v5031_v63, 0.0  ;;  %v1497_v40 = vmax.f32 %v5032_v38, 0.0  ;;  %v5035_v63 = vld [vmem:[#allocation28_spill] sm:$0xff]  ;;  %v5036_v38 = vld [vmem:[#allocation49_spill] sm:$0xff] }
 0x212   :  { %2844 = vmatprep.subr.mxu1 %v4275_v60  ;;  %2810 = vmatpush3.msra.mxu0 %v5028_v1  ;;  %709 = vst [vmem:[#allocation10 + $0x8] sm:$0xff] %v706_v32  ;;  %v1651_v30 = vmax.f32 %v1647_v28, 0.0  ;;  %v5033_v28 = vld [vmem:[#allocation50_spill] sm:$0xff]  ;;  %v5034_v32 = vld [vmem:[#allocation27_spill] sm:$0xff] }
 0x213   :  { %2845 = vmatpush3.msra.mxu1 %v5029_v29  ;;  %2811 = vmatprep.subr.mxu0 %v4286_v33 }
 0x214   :  { %2846 = vmatprep.subr.mxu1 %v5030_v62  ;;  %2812 = vmatpush3.msra.mxu0 %v4294_v37 }
 0x215   :  { %2847 = vmatpush3.msra.mxu1 %v4297_v59  ;;  %1564 = vmatmul.mubr.f32.vlgmr.msra.gmra.mxu0 %v1495_v58 }
 0x216   :  { %1634 = vmatmul.mubr.f32.vlgmr.msra.gmra.mxu1 %v1497_v40  ;;  %2851 = vmatprep.subr.mxu0 %v4022_v48  ;;  %v5037_v40 = vld [vmem:[#allocation51_spill] sm:$0xff] }
 0x217   :  { %2886 = vmatprep.subr.mxu1 %v4025_v49  ;;  %2852 = vmatpush3.msra.mxu0 %v4028_v51 }
 0x218   :  { %1718 = vmatprep.mubr.f32.mxu0 %v1651_v30  ;;  %2887 = vmatpush3.msra.mxu1 %v4031_v52  ;;  %v5038_v30 = vld [vmem:[#allocation18_spill] sm:$0xff] }
 0x219   :  { %1788 = vmatprep.mubr.f32.mxu1 %v1653_v39  ;;  %2853 = vmatprep.subr.mxu0 %v4034_v53 }
 0x21a   :  { %2888 = vmatprep.subr.mxu1 %v4037_v54  ;;  %2854 = vmatpush3.msra.mxu0 %v4040_v55 }
 0x21b   :  { %2889 = vmatpush3.msra.mxu1 %v4043_v22  ;;  %2855 = vmatprep.subr.mxu0 %v4046_v9 }
 0x21c   :  { %2890 = vmatprep.subr.mxu1 %v4049_v11  ;;  %2856 = vmatpush3.msra.mxu0 %v4052_v19 }
 0x21d   :  { %2891 = vmatpush3.msra.mxu1 %v4055_v8  ;;  %2857 = vmatprep.subr.mxu0 %v4058_v21 }
 0x21e   :  { %2892 = vmatprep.subr.mxu1 %v4061_v16  ;;  %2858 = vmatpush3.msra.mxu0 %v4064_v0 }
 0x21f   :  { %2893 = vmatpush3.msra.mxu1 %v4067_v4  ;;  %2859 = vmatprep.subr.mxu0 %v4070_v13 }
 0x220   :  { %2894 = vmatprep.subr.mxu1 %v4073_v34  ;;  %2860 = vmatpush3.msra.mxu0 %v4076_v35 }
 0x221   :  { %2895 = vmatpush3.msra.mxu1 %v4079_v36  ;;  %2861 = vmatprep.subr.mxu0 %v4082_v41 }
 0x222   :  { %2896 = vmatprep.subr.mxu1 %v4085_v42  ;;  %2862 = vmatpush3.msra.mxu0 %v4981_v23 }
 0x223   :  { %2897 = vmatpush3.msra.mxu1 %v4982_v6  ;;  %2863 = vmatprep.subr.mxu0 %v4983_v14 }
 0x224   :  { %2898 = vmatprep.subr.mxu1 %v4984_v7  ;;  %2864 = vmatpush3.msra.mxu0 %v4100_v47 }
 0x225   :  { %2899 = vmatpush3.msra.mxu1 %v4103_v50  ;;  %2865 = vmatprep.subr.mxu0 %v4106_v43 }
 0x226   :  { %2900 = vmatprep.subr.mxu1 %v4109_v44  ;;  %2866 = vmatpush3.msra.mxu0 %v4112_v45 }
 0x227   :  { %2901 = vmatpush3.msra.mxu1 %v4115_v46  ;;  %2867 = vmatprep.subr.mxu0 %v4190_v25 }
 0x228   :  { %2902 = vmatprep.subr.mxu1 %v4193_v3  ;;  %2868 = vmatpush3.msra.mxu0 %v4196_v2  ;;  %v5044_v2 = vld [vmem:[#allocation64_spill] sm:$0xff]  ;;  %v5045_v3 = vld [vmem:[#allocation23_spill] sm:$0xff] }
 0x229   :  { %2903 = vmatpush3.msra.mxu1 %v4199_v17  ;;  %2869 = vmatprep.subr.mxu0 %v4202_v24  ;;  %v5039_v24 = vld [vmem:[#allocation19_spill] sm:$0xff] }
 0x22a   :  { %2904 = vmatprep.subr.mxu1 %v4205_v5  ;;  %2870 = vmatpush3.msra.mxu0 %v4208_v26  ;;  %v5040_v26 = vld [vmem:[#allocation20_spill] sm:$0xff]  ;;  %v5043_v17 = vld [vmem:[#allocation43_spill] sm:$0xff] }
 0x22b   :  { %2905 = vmatpush3.msra.mxu1 %v4211_v27  ;;  %2871 = vmatprep.subr.mxu0 %v5033_v28  ;;  %v2463_v58 = vpop.f32.mrf.mxu0  ;;  %v2498_v61 = vpop.f32.mrf.mxu1  ;;  %v5041_v28 = vld [vmem:[#allocation21_spill] sm:$0xff] }
 0x22c   :  { %2906 = vmatprep.subr.mxu1 %v5034_v32  ;;  %2872 = vmatpush3.msra.mxu0 %v5035_v63  ;;  %v5042_v32 = vld [vmem:[#allocation22_spill] sm:$0xff]  ;;  %v1798_v63 = vmul.f32 %v5044_v2, %v5043_v17 }
 0x22d   :  { %2907 = vmatpush3.msra.mxu1 %v5036_v38  ;;  %2873 = vmatprep.subr.mxu0 %v5037_v40  ;;  %v2464_v39 = vpop.f32.mrf.mxu0  ;;  %v2499_v5 = vpop.f32.mrf.mxu1  ;;  %v5046_v38 = vld [vmem:[#allocation24_spill] sm:$0xff] }
 0x22e   :  { %2908 = vmatprep.subr.mxu1 %v5038_v30  ;;  %2874 = vmatpush3.msra.mxu0 %v5039_v24  ;;  %v2465_v27 = vadd.f32 %v2464_v39, %v2463_v58  ;;  %v1800_v30 = vmul.f32 %v5044_v2, %v4908_v10  ;;  %v2500_v24 = vadd.f32 %v2499_v5, %v2498_v61  ;;  %v5047_v58 = vld [vmem:[#allocation31_spill] sm:$0xff]  ;;  %v5048_v5 = vld [vmem:[#allocation65_spill] sm:$0xff] }
 0x22f   :  { %2909 = vmatpush3.msra.mxu1 %v5040_v26  ;;  %2875 = vmatprep.subr.mxu0 %v5041_v28 }
 0x230   :  { %2910 = vmatprep.subr.mxu1 %v5042_v32  ;;  %2876 = vmatpush3.msra.mxu0 %v5045_v3  ;;  %v791_v40 = vadd.f32 %v2465_v27, %v4241_v57  ;;  %v1804_v2 = vadd.f32 %v1800_v30, %v3577_v12  ;;  %v1650_v27 = vmax.f32 %v5048_v5, 0.0  ;;  %v5051_v30 = vld [vmem:[#allocation34_spill] sm:$0xff]  ;;  %v5054_v5 = vld [vmem:[#allocation47_spill] sm:$0xff] }
 0x231   :  { %2911 = vmatpush3.msra.mxu1 %v5046_v38  ;;  %2877 = vmatprep.subr.mxu0 %v5022_v31  ;;  %v1802_v38 = vadd.f32 %v1798_v63, %v5027_v20 }
 0x232   :  { %2912 = vmatprep.subr.mxu1 %v5023_v15  ;;  %2878 = vmatpush3.msra.mxu0 %v5024_v18  ;;  %v861_v39 = vadd.f32 %v2500_v24, %v791_v40  ;;  %v5049_v24 = vld [vmem:[#allocation66_spill] sm:$0xff]  ;;  %v1808_v40 = vmax.f32 %v1804_v2, 0.0  ;;  %v5053_v2 = vld [vmem:[#allocation36_spill] sm:$0xff] }
 0x233   :  { %2913 = vmatpush3.msra.mxu1 %v5047_v58  ;;  %2879 = vmatprep.subr.mxu0 %v5026_v56  ;;  %v1652_v61 = vmax.f32 %v5049_v24, 0.0  ;;  %v1806_v63 = vmax.f32 %v1802_v38, 0.0  ;;  %v5050_v38 = vld [vmem:[#allocation46_spill] sm:$0xff] }
 0x234   :  { %2914 = vmatprep.subr.mxu1 %v4275_v60  ;;  %2880 = vmatpush3.msra.mxu0 %v5028_v1  ;;  %864 = vst [vmem:[#allocation10 + $0x10] sm:$0xff] %v861_v39  ;;  %v5052_v39 = vld [vmem:[#allocation35_spill] sm:$0xff]  ;;  %v5056_v24 = vld [vmem:[#allocation26_spill] sm:$0xff] }
 0x235   :  { %2915 = vmatpush3.msra.mxu1 %v5029_v29  ;;  %2881 = vmatprep.subr.mxu0 %v4286_v33 }
 0x236   :  { %2916 = vmatprep.subr.mxu1 %v5030_v62  ;;  %2882 = vmatpush3.msra.mxu0 %v4294_v37 }
 0x237   :  { %2917 = vmatpush3.msra.mxu1 %v4297_v59  ;;  %1719 = vmatmul.mubr.f32.vlgmr.msra.gmra.mxu0 %v1650_v27  ;;  %v5055_v27 = vld [vmem:[#allocation48_spill] sm:$0xff] }
 0x238   :  { %1789 = vmatmul.mubr.f32.vlgmr.msra.gmra.mxu1 %v1652_v61  ;;  %2921 = vmatprep.subr.mxu0 %v4022_v48  ;;  %v5057_v61 = vld [vmem:[#allocation50_spill] sm:$0xff] }
 0x239   :  { %2956 = vmatprep.subr.mxu1 %v4025_v49  ;;  %2922 = vmatpush3.msra.mxu0 %v4028_v51 }
 0x23a   :  { %1873 = vmatprep.mubr.f32.mxu0 %v1806_v63  ;;  %2957 = vmatpush3.msra.mxu1 %v4031_v52  ;;  %v5058_v63 = vld [vmem:[#allocation27_spill] sm:$0xff] }
 0x23b   :  { %1943 = vmatprep.mubr.f32.mxu1 %v1808_v40  ;;  %2923 = vmatprep.subr.mxu0 %v4034_v53 }
 0x23c   :  { %2958 = vmatprep.subr.mxu1 %v4037_v54  ;;  %2924 = vmatpush3.msra.mxu0 %v4040_v55 }
 0x23d   :  { %2959 = vmatpush3.msra.mxu1 %v4043_v22  ;;  %2925 = vmatprep.subr.mxu0 %v4046_v9 }
 0x23e   :  { %2960 = vmatprep.subr.mxu1 %v4049_v11  ;;  %2926 = vmatpush3.msra.mxu0 %v4052_v19 }
 0x23f   :  { %2961 = vmatpush3.msra.mxu1 %v4055_v8  ;;  %2927 = vmatprep.subr.mxu0 %v4058_v21 }
 0x240   :  { %2962 = vmatprep.subr.mxu1 %v4061_v16  ;;  %2928 = vmatpush3.msra.mxu0 %v4064_v0 }
 0x241   :  { %2963 = vmatpush3.msra.mxu1 %v4067_v4  ;;  %2929 = vmatprep.subr.mxu0 %v4070_v13 }
 0x242   :  { %2964 = vmatprep.subr.mxu1 %v4073_v34  ;;  %2930 = vmatpush3.msra.mxu0 %v4076_v35 }
 0x243   :  { %2965 = vmatpush3.msra.mxu1 %v4079_v36  ;;  %2931 = vmatprep.subr.mxu0 %v4082_v41 }
 0x244   :  { %2966 = vmatprep.subr.mxu1 %v4085_v42  ;;  %2932 = vmatpush3.msra.mxu0 %v4981_v23 }
 0x245   :  { %2967 = vmatpush3.msra.mxu1 %v4982_v6  ;;  %2933 = vmatprep.subr.mxu0 %v4983_v14 }
 0x246   :  { %2968 = vmatprep.subr.mxu1 %v4984_v7  ;;  %2934 = vmatpush3.msra.mxu0 %v4100_v47 }
 0x247   :  { %2969 = vmatpush3.msra.mxu1 %v4103_v50  ;;  %2935 = vmatprep.subr.mxu0 %v4106_v43 }
 0x248   :  { %2970 = vmatprep.subr.mxu1 %v4109_v44  ;;  %2936 = vmatpush3.msra.mxu0 %v4112_v45  ;;  %v5063_v45 = vld [vmem:[#allocation19_spill] sm:$0xff] }
 0x249   :  { %2971 = vmatpush3.msra.mxu1 %v4115_v46  ;;  %2937 = vmatprep.subr.mxu0 %v4190_v25  ;;  %v5059_v46 = vld [vmem:[#allocation28_spill] sm:$0xff] }
 0x24a   :  { %2972 = vmatprep.subr.mxu1 %v5050_v38  ;;  %2938 = vmatpush3.msra.mxu0 %v5051_v30  ;;  %v5060_v38 = vld [vmem:[#allocation49_spill] sm:$0xff]  ;;  %v5061_v30 = vld [vmem:[#allocation51_spill] sm:$0xff] }
 0x24b   :  { %2973 = vmatpush3.msra.mxu1 %v5052_v39  ;;  %2939 = vmatprep.subr.mxu0 %v5053_v2  ;;  %v5062_v39 = vld [vmem:[#allocation18_spill] sm:$0xff] }
 0x24c   :  { %2974 = vmatprep.subr.mxu1 %v5054_v5  ;;  %2940 = vmatpush3.msra.mxu0 %v5055_v27 }
 0x24d   :  { %2975 = vmatpush3.msra.mxu1 %v5056_v24  ;;  %2941 = vmatprep.subr.mxu0 %v5057_v61  ;;  %v2533_v40 = vpop.f32.mrf.mxu0  ;;  %v2568_v25 = vpop.f32.mrf.mxu1 }
 0x24e   :  { %2976 = vmatprep.subr.mxu1 %v5058_v63  ;;  %2942 = vmatpush3.msra.mxu0 %v5059_v46  ;;  %v5064_v63 = vld [vmem:[#allocation67_spill] sm:$0xff] }
 0x24f   :  { %2977 = vmatpush3.msra.mxu1 %v5060_v38  ;;  %2943 = vmatprep.subr.mxu0 %v5061_v30  ;;  %v2534_v2 = vpop.f32.mrf.mxu0  ;;  %v2569_v5 = vpop.f32.mrf.mxu1  ;;  %v1953_v46 = vmul.f32 %v5064_v63, %v5043_v17  ;;  %v5065_v38 = vld [vmem:[#allocation24_spill] sm:$0xff] }
 0x250   :  { %2978 = vmatprep.subr.mxu1 %v5062_v39  ;;  %2944 = vmatpush3.msra.mxu0 %v5063_v45  ;;  %v2535_v24 = vadd.f32 %v2534_v2, %v2533_v40  ;;  %v1955_v39 = vmul.f32 %v5064_v63, %v4908_v10  ;;  %v2570_v45 = vadd.f32 %v2569_v5, %v2568_v25  ;;  %v5066_v5 = vld [vmem:[#allocation68_spill] sm:$0xff]  ;;  %v5068_v63 = vld [vmem:[#allocation15_spill] sm:$0xff] }
 0x251   :  { %2979 = vmatpush3.msra.mxu1 %v5040_v26  ;;  %2945 = vmatprep.subr.mxu0 %v5041_v28  ;;  %v1957_v40 = vadd.f32 %v1953_v46, %v5027_v20 }
 0x252   :  { %2980 = vmatprep.subr.mxu1 %v5042_v32  ;;  %2946 = vmatpush3.msra.mxu0 %v5045_v3  ;;  %v946_v30 = vadd.f32 %v2535_v24, %v4241_v57  ;;  %v1959_v25 = vadd.f32 %v1955_v39, %v3577_v12  ;;  %v1805_v24 = vmax.f32 %v5066_v5, 0.0  ;;  %v5072_v5 = vld [vmem:[#allocation34_spill] sm:$0xff] }
 0x253   :  { %2981 = vmatpush3.msra.mxu1 %v5065_v38  ;;  %2947 = vmatprep.subr.mxu0 %v5022_v31  ;;  %v1961_v46 = vmax.f32 %v1957_v40, 0.0  ;;  %v5070_v40 = vld [vmem:[#allocation25_spill] sm:$0xff] }
 0x254   :  { %2982 = vmatprep.subr.mxu1 %v5023_v15  ;;  %2948 = vmatpush3.msra.mxu0 %v5024_v18  ;;  %v1016_v2 = vadd.f32 %v2570_v45, %v946_v30  ;;  %v5067_v45 = vld [vmem:[#allocation17_spill] sm:$0xff]  ;;  %v1963_v39 = vmax.f32 %v1959_v25, 0.0  ;;  %v5071_v25 = vld [vmem:[#allocation46_spill] sm:$0xff] }
 0x255   :  { %2983 = vmatpush3.msra.mxu1 %v5047_v58  ;;  %2949 = vmatprep.subr.mxu0 %v5026_v56  ;;  %v1807_v30 = vmax.f32 %v5067_v45, 0.0  ;;  %v5074_v45 = vld [vmem:[#allocation36_spill] sm:$0xff] }
 0x256   :  { %2984 = vmatprep.subr.mxu1 %v4275_v60  ;;  %2950 = vmatpush3.msra.mxu0 %v5028_v1  ;;  %1019 = vst [vmem:[#allocation10 + $0x18] sm:$0xff] %v1016_v2  ;;  %v5069_v2 = vld [vmem:[#allocation16_spill] sm:$0xff] }
 0x257   :  { %2985 = vmatpush3.msra.mxu1 %v5029_v29  ;;  %2951 = vmatprep.subr.mxu0 %v4286_v33 }
 0x258   :  { %2986 = vmatprep.subr.mxu1 %v5030_v62  ;;  %2952 = vmatpush3.msra.mxu0 %v4294_v37 }
 0x259   :  { %2987 = vmatpush3.msra.mxu1 %v4297_v59  ;;  %1874 = vmatmul.mubr.f32.vlgmr.msra.gmra.mxu0 %v1805_v24  ;;  %v5073_v24 = vld [vmem:[#allocation35_spill] sm:$0xff] }
 0x25a   :  { %1944 = vmatmul.mubr.f32.vlgmr.msra.gmra.mxu1 %v1807_v30  ;;  %2991 = vmatprep.subr.mxu0 %v4022_v48  ;;  %v5075_v30 = vld [vmem:[#allocation47_spill] sm:$0xff] }
 0x25b   :  { %3026 = vmatprep.subr.mxu1 %v4025_v49  ;;  %2992 = vmatpush3.msra.mxu0 %v4028_v51 }
 0x25c   :  { %2028 = vmatprep.mubr.f32.mxu0 %v1961_v46  ;;  %3027 = vmatpush3.msra.mxu1 %v4031_v52  ;;  %v5076_v46 = vld [vmem:[#allocation26_spill] sm:$0xff] }
 0x25d   :  { %2098 = vmatprep.mubr.f32.mxu1 %v1963_v39  ;;  %2993 = vmatprep.subr.mxu0 %v4034_v53  ;;  %v5077_v39 = vld [vmem:[#allocation27_spill] sm:$0xff] }
 0x25e   :  { %3028 = vmatprep.subr.mxu1 %v4037_v54  ;;  %2994 = vmatpush3.msra.mxu0 %v4040_v55 }
 0x25f   :  { %3029 = vmatpush3.msra.mxu1 %v4043_v22  ;;  %2995 = vmatprep.subr.mxu0 %v4046_v9 }
 0x260   :  { %3030 = vmatprep.subr.mxu1 %v4049_v11  ;;  %2996 = vmatpush3.msra.mxu0 %v4052_v19 }
 0x261   :  { %3031 = vmatpush3.msra.mxu1 %v4055_v8  ;;  %2997 = vmatprep.subr.mxu0 %v4058_v21 }
 0x262   :  { %3032 = vmatprep.subr.mxu1 %v4061_v16  ;;  %2998 = vmatpush3.msra.mxu0 %v4064_v0 }
 0x263   :  { %3033 = vmatpush3.msra.mxu1 %v4067_v4  ;;  %2999 = vmatprep.subr.mxu0 %v4070_v13 }
 0x264   :  { %3034 = vmatprep.subr.mxu1 %v4073_v34  ;;  %3000 = vmatpush3.msra.mxu0 %v4076_v35 }
 0x265   :  { %3035 = vmatpush3.msra.mxu1 %v4079_v36  ;;  %3001 = vmatprep.subr.mxu0 %v4082_v41 }
 0x266   :  { %3036 = vmatprep.subr.mxu1 %v4085_v42  ;;  %3002 = vmatpush3.msra.mxu0 %v4981_v23 }
 0x267   :  { %3037 = vmatpush3.msra.mxu1 %v4982_v6  ;;  %3003 = vmatprep.subr.mxu0 %v4983_v14 }
 0x268   :  { %3038 = vmatprep.subr.mxu1 %v4984_v7  ;;  %3004 = vmatpush3.msra.mxu0 %v4100_v47 }
 0x269   :  { %3039 = vmatpush3.msra.mxu1 %v4103_v50  ;;  %3005 = vmatprep.subr.mxu0 %v4106_v43 }
 0x26a   :  { %3040 = vmatprep.subr.mxu1 %v4109_v44  ;;  %3006 = vmatpush3.msra.mxu0 %v5068_v63  ;;  %v5078_v63 = vld [vmem:[#allocation28_spill] sm:$0xff]  ;;  %v5082_v44 = vld [vmem:[#allocation19_spill] sm:$0xff] }
 0x26b   :  { %3041 = vmatpush3.msra.mxu1 %v5069_v2  ;;  %3007 = vmatprep.subr.mxu0 %v5070_v40 }
 0x26c   :  { %3042 = vmatprep.subr.mxu1 %v5071_v25  ;;  %3008 = vmatpush3.msra.mxu0 %v5072_v5  ;;  %v5079_v25 = vld [vmem:[#allocation49_spill] sm:$0xff]  ;;  %v5080_v5 = vld [vmem:[#allocation51_spill] sm:$0xff] }
 0x26d   :  { %3043 = vmatpush3.msra.mxu1 %v5073_v24  ;;  %3009 = vmatprep.subr.mxu0 %v5074_v45  ;;  %v5081_v24 = vld [vmem:[#allocation18_spill] sm:$0xff] }
 0x26e   :  { %3044 = vmatprep.subr.mxu1 %v5075_v30  ;;  %3010 = vmatpush3.msra.mxu0 %v5055_v27 }
 0x26f   :  { %3045 = vmatpush3.msra.mxu1 %v5076_v46  ;;  %3011 = vmatprep.subr.mxu0 %v5057_v61  ;;  %v2603_v2 = vpop.f32.mrf.mxu0  ;;  %v2638_v40 = vpop.f32.mrf.mxu1 }
 0x270   :  { %3046 = vmatprep.subr.mxu1 %v5077_v39  ;;  %3012 = vmatpush3.msra.mxu0 %v5078_v63  ;;  %v5083_v39 = vld [vmem:[#allocation69_spill] sm:$0xff] }
 0x271   :  { %3047 = vmatpush3.msra.mxu1 %v5079_v25  ;;  %3013 = vmatprep.subr.mxu0 %v5080_v5  ;;  %v2604_v45 = vpop.f32.mrf.mxu0  ;;  %v2639_v30 = vpop.f32.mrf.mxu1  ;;  %v2108_v63 = vmul.f32 %v5083_v39, %v5043_v17 }
 0x272   :  { %3048 = vmatprep.subr.mxu1 %v5081_v24  ;;  %3014 = vmatpush3.msra.mxu0 %v5082_v44  ;;  %v2605_v46 = vadd.f32 %v2604_v45, %v2603_v2  ;;  %v2110_v24 = vmul.f32 %v5083_v39, %v4908_v10  ;;  %v2640_v44 = vadd.f32 %v2639_v30, %v2638_v40  ;;  %v5084_v40 = vld [vmem:[#allocation45_spill] sm:$0xff] }
 0x273   :  { %3049 = vmatpush3.msra.mxu1 %v5040_v26  ;;  %3015 = vmatprep.subr.mxu0 %v5041_v28  ;;  %v2112_v17 = vadd.f32 %v2108_v63, %v5027_v20  ;;  %v1960_v45 = vmax.f32 %v5084_v40, 0.0 }
 0x274   :  { %3050 = vmatprep.subr.mxu1 %v5042_v32  ;;  %3016 = vmatpush3.msra.mxu0 %v5045_v3  ;;  %v1101_v5 = vadd.f32 %v2605_v46, %v4241_v57  ;;  %v2114_v10 = vadd.f32 %v2110_v24, %v3577_v12 }
 0x275   :  { %3051 = vmatpush3.msra.mxu1 %v5065_v38  ;;  %3017 = vmatprep.subr.mxu0 %v5022_v31  ;;  %v2116_v20 = vmax.f32 %v2112_v17, 0.0 }
 0x276   :  { %3052 = vmatprep.subr.mxu1 %v5023_v15  ;;  %3018 = vmatpush3.msra.mxu0 %v5024_v18  ;;  %v1171_v2 = vadd.f32 %v2640_v44, %v1101_v5  ;;  %v5085_v44 = vld [vmem:[#allocation70_spill] sm:$0xff]  ;;  %v2118_v12 = vmax.f32 %v2114_v10, 0.0 }
 0x277   :  { %3053 = vmatpush3.msra.mxu1 %v5047_v58  ;;  %3019 = vmatprep.subr.mxu0 %v5026_v56  ;;  %v1962_v5 = vmax.f32 %v5085_v44, 0.0 }
 0x278   :  { %3054 = vmatprep.subr.mxu1 %v4275_v60  ;;  %3020 = vmatpush3.msra.mxu0 %v5028_v1  ;;  %1174 = vst [vmem:[#allocation10 + $0x20] sm:$0xff] %v1171_v2 }
 0x279   :  { %3055 = vmatpush3.msra.mxu1 %v5029_v29  ;;  %3021 = vmatprep.subr.mxu0 %v4286_v33 }
 0x27a   :  { %3056 = vmatprep.subr.mxu1 %v5030_v62  ;;  %3022 = vmatpush3.msra.mxu0 %v4294_v37 }
 0x27b   :  { %3057 = vmatpush3.msra.mxu1 %v4297_v59  ;;  %2029 = vmatmul.mubr.f32.vlgmr.msra.gmra.mxu0 %v1960_v45 }
 0x27c   :  { %2099 = vmatmul.mubr.f32.vlgmr.msra.gmra.mxu1 %v1962_v5  ;;  %3061 = vmatprep.subr.mxu0 %v4022_v48  ;;  %v5086_v48 = vld [vmem:[#allocation40_spill] sm:$0xff] }
 0x27d   :  { %3096 = vmatprep.subr.mxu1 %v4025_v49  ;;  %3062 = vmatpush3.msra.mxu0 %v4028_v51  ;;  %v5087_v49 = vld [vmem:[#allocation15_spill] sm:$0xff]  ;;  %v5088_v51 = vld [vmem:[#allocation16_spill] sm:$0xff] }
 0x27e   :  { %2183 = vmatprep.mubr.f32.mxu0 %v2116_v20  ;;  %3097 = vmatpush3.msra.mxu1 %v4031_v52  ;;  %v5089_v52 = vld [vmem:[#allocation25_spill] sm:$0xff] }
 0x27f   :  { %2253 = vmatprep.mubr.f32.mxu1 %v2118_v12  ;;  %3063 = vmatprep.subr.mxu0 %v4034_v53  ;;  %v5090_v53 = vld [vmem:[#allocation46_spill] sm:$0xff] }
 0x280   :  { %3098 = vmatprep.subr.mxu1 %v4037_v54  ;;  %3064 = vmatpush3.msra.mxu0 %v4040_v55  ;;  %v5091_v54 = vld [vmem:[#allocation34_spill] sm:$0xff]  ;;  %v5092_v55 = vld [vmem:[#allocation35_spill] sm:$0xff] }
 0x281   :  { %3099 = vmatpush3.msra.mxu1 %v4043_v22  ;;  %3065 = vmatprep.subr.mxu0 %v4046_v9  ;;  %v5093_v22 = vld [vmem:[#allocation36_spill] sm:$0xff]  ;;  %v5094_v9 = vld [vmem:[#allocation47_spill] sm:$0xff] }
 0x282   :  { %3100 = vmatprep.subr.mxu1 %v4049_v11  ;;  %3066 = vmatpush3.msra.mxu0 %v4052_v19  ;;  %v5095_v11 = vld [vmem:[#allocation26_spill] sm:$0xff]  ;;  %v5096_v19 = vld [vmem:[#allocation27_spill] sm:$0xff] }
 0x283   :  { %3101 = vmatpush3.msra.mxu1 %v4055_v8  ;;  %3067 = vmatprep.subr.mxu0 %v4058_v21 }
 0x284   :  { %3102 = vmatprep.subr.mxu1 %v4061_v16  ;;  %3068 = vmatpush3.msra.mxu0 %v4064_v0  ;;  %v5097_v16 = vld [vmem:[#allocation28_spill] sm:$0xff]  ;;  %v5098_v0 = vld [vmem:[#allocation51_spill] sm:$0xff] }
 0x285   :  { %3103 = vmatpush3.msra.mxu1 %v4067_v4  ;;  %3069 = vmatprep.subr.mxu0 %v4070_v13  ;;  %v5099_v4 = vld [vmem:[#allocation18_spill] sm:$0xff] }
 0x286   :  { %3104 = vmatprep.subr.mxu1 %v4073_v34  ;;  %3070 = vmatpush3.msra.mxu0 %v4076_v35  ;;  %v5100_v35 = vld [vmem:[#allocation19_spill] sm:$0xff] }
 0x287   :  { %3105 = vmatpush3.msra.mxu1 %v4079_v36  ;;  %3071 = vmatprep.subr.mxu0 %v4082_v41 }
 0x288   :  { %3106 = vmatprep.subr.mxu1 %v4085_v42  ;;  %3072 = vmatpush3.msra.mxu0 %v4981_v23  ;;  %v5102_v23 = vld [vmem:[#allocation44_spill] sm:$0xff] }
 0x289   :  { %3107 = vmatpush3.msra.mxu1 %v4982_v6  ;;  %3073 = vmatprep.subr.mxu0 %v4983_v14  ;;  %v2117_v6 = vmax.f32 %v5102_v23, 0.0 }
 0x28a   :  { %3108 = vmatprep.subr.mxu1 %v4984_v7  ;;  %3074 = vmatpush3.msra.mxu0 %v4100_v47  ;;  %v5101_v47 = vld [vmem:[#allocation41_spill] sm:$0xff] }
 0x28b   :  { %3109 = vmatpush3.msra.mxu1 %v4103_v50  ;;  %3075 = vmatprep.subr.mxu0 %v4106_v43  ;;  %v2115_v50 = vmax.f32 %v5101_v47, 0.0 }
 0x28c   :  { %3110 = vmatprep.subr.mxu1 %v5086_v48  ;;  %3076 = vmatpush3.msra.mxu0 %v5087_v49 }
 0x28d   :  { %3111 = vmatpush3.msra.mxu1 %v5088_v51  ;;  %3077 = vmatprep.subr.mxu0 %v5089_v52 }
 0x28e   :  { %3112 = vmatprep.subr.mxu1 %v5090_v53  ;;  %3078 = vmatpush3.msra.mxu0 %v5091_v54 }
 0x28f   :  { %3113 = vmatpush3.msra.mxu1 %v5092_v55  ;;  %3079 = vmatprep.subr.mxu0 %v5093_v22 }
 0x290   :  { %3114 = vmatprep.subr.mxu1 %v5094_v9  ;;  %3080 = vmatpush3.msra.mxu0 %v5055_v27 }
 0x291   :  { %3115 = vmatpush3.msra.mxu1 %v5095_v11  ;;  %3081 = vmatprep.subr.mxu0 %v5057_v61  ;;  %v2673_v8 = vpop.f32.mrf.mxu0  ;;  %v2708_v21 = vpop.f32.mrf.mxu1 }
 0x292   :  { %3116 = vmatprep.subr.mxu1 %v5096_v19  ;;  %3082 = vmatpush3.msra.mxu0 %v5097_v16 }
 0x293   :  { %3117 = vmatpush3.msra.mxu1 %v5079_v25  ;;  %3083 = vmatprep.subr.mxu0 %v5098_v0  ;;  %v2674_v13 = vpop.f32.mrf.mxu0  ;;  %v2709_v34 = vpop.f32.mrf.mxu1 }
 0x294   :  { %3118 = vmatprep.subr.mxu1 %v5099_v4  ;;  %3084 = vmatpush3.msra.mxu0 %v5100_v35  ;;  %v2675_v36 = vadd.f32 %v2674_v13, %v2673_v8  ;;  %v2710_v42 = vadd.f32 %v2709_v34, %v2708_v21 }
 0x295   :  { %3119 = vmatpush3.msra.mxu1 %v5040_v26  ;;  %3085 = vmatprep.subr.mxu0 %v5041_v28 }
 0x296   :  { %3120 = vmatprep.subr.mxu1 %v5042_v32  ;;  %3086 = vmatpush3.msra.mxu0 %v5045_v3  ;;  %v1256_v41 = vadd.f32 %v2675_v36, %v4241_v57 }
 0x297   :  { %3121 = vmatpush3.msra.mxu1 %v5065_v38  ;;  %3087 = vmatprep.subr.mxu0 %v5022_v31 }
 0x298   :  { %3122 = vmatprep.subr.mxu1 %v5023_v15  ;;  %3088 = vmatpush3.msra.mxu0 %v5024_v18  ;;  %v1326_v43 = vadd.f32 %v2710_v42, %v1256_v41 }
 0x299   :  { %3123 = vmatpush3.msra.mxu1 %v5047_v58  ;;  %3089 = vmatprep.subr.mxu0 %v5026_v56 }
 0x29a   :  { %3124 = vmatprep.subr.mxu1 %v4275_v60  ;;  %3090 = vmatpush3.msra.mxu0 %v5028_v1  ;;  %1329 = vst [vmem:[#allocation10 + $0x28] sm:$0xff] %v1326_v43 }
 0x29b   :  { %3125 = vmatpush3.msra.mxu1 %v5029_v29  ;;  %3091 = vmatprep.subr.mxu0 %v4286_v33 }
 0x29c   :  { %3126 = vmatprep.subr.mxu1 %v5030_v62  ;;  %3092 = vmatpush3.msra.mxu0 %v4294_v37 }
 0x29d   :  { %3127 = vmatpush3.msra.mxu1 %v4297_v59  ;;  %2184 = vmatmul.mubr.f32.vlgmr.msra.gmra.mxu0 %v2115_v50 }
 0x29e   :  { %2254 = vmatmul.mubr.f32.vlgmr.msra.gmra.mxu1 %v2117_v6 }
 0x2b3   :  { %v2743_v14 = vpop.f32.mrf.mxu0 }
 0x2b4   :  { %v2778_v7 = vpop.f32.mrf.mxu1 }
 0x2b5   :  { %v2744_v3 = vpop.f32.mrf.mxu0 }
 0x2b6   :  { %v2779_v26 = vpop.f32.mrf.mxu1  ;;  %v2745_v31 = vadd.f32 %v2744_v3, %v2743_v14 }
 0x2b7   :  { %v2780_v33 = vadd.f32 %v2779_v26, %v2778_v7 }
 0x2b8   :  { %v1411_v60 = vadd.f32 %v2745_v31, %v4241_v57 }
 0x2ba   :  { %v1481_v1 = vadd.f32 %v2780_v33, %v1411_v60 }
 0x2bc   :  { %1484 = vst [vmem:[#allocation10 + $0x30] sm:$0xff] %v1481_v1 }
 0x2d5   :  { %v2813_v56 = vpop.f32.mrf.mxu0 }
 0x2d6   :  { %v2848_v15 = vpop.f32.mrf.mxu1 }
 0x2d7   :  { %v2814_v18 = vpop.f32.mrf.mxu0 }
 0x2d8   :  { %v2849_v29 = vpop.f32.mrf.mxu1  ;;  %v2815_v62 = vadd.f32 %v2814_v18, %v2813_v56 }
 0x2d9   :  { %v2850_v59 = vadd.f32 %v2849_v29, %v2848_v15 }
 0x2da   :  { %v1566_v37 = vadd.f32 %v2815_v62, %v4241_v57 }
 0x2dc   :  { %v1636_v28 = vadd.f32 %v2850_v59, %v1566_v37 }
 0x2de   :  { %1639 = vst [vmem:[#allocation10 + $0x38] sm:$0xff] %v1636_v28 }
 0x2f7   :  { %v2883_v32 = vpop.f32.mrf.mxu0 }
 0x2f8   :  { %v2918_v58 = vpop.f32.mrf.mxu1 }
 0x2f9   :  { %v2884_v38 = vpop.f32.mrf.mxu0 }
 0x2fa   :  { %v2919_v27 = vpop.f32.mrf.mxu1  ;;  %v2885_v61 = vadd.f32 %v2884_v38, %v2883_v32 }
 0x2fb   :  { %v2920_v25 = vadd.f32 %v2919_v27, %v2918_v58 }
 0x2fc   :  { %v1721_v63 = vadd.f32 %v2885_v61, %v4241_v57 }
 0x2fe   :  { %v1791_v24 = vadd.f32 %v2920_v25, %v1721_v63 }
 0x300   :  { %1794 = vst [vmem:[#allocation10 + $0x40] sm:$0xff] %v1791_v24 }
 0x319   :  { %v2953_v30 = vpop.f32.mrf.mxu0 }
 0x31a   :  { %v2988_v46 = vpop.f32.mrf.mxu1 }
 0x31b   :  { %v2954_v39 = vpop.f32.mrf.mxu0 }
 0x31c   :  { %v2989_v2 = vpop.f32.mrf.mxu1  ;;  %v2955_v17 = vadd.f32 %v2954_v39, %v2953_v30 }
 0x31d   :  { %v2990_v40 = vadd.f32 %v2989_v2, %v2988_v46 }
 0x31e   :  { %v1876_v10 = vadd.f32 %v2955_v17, %v4241_v57 }
 0x320   :  { %v1946_v45 = vadd.f32 %v2990_v40, %v1876_v10 }
 0x322   :  { %1949 = vst [vmem:[#allocation10 + $0x48] sm:$0xff] %v1946_v45 }
 0x33b   :  { %v3023_v44 = vpop.f32.mrf.mxu0 }
 0x33c   :  { %v3058_v5 = vpop.f32.mrf.mxu1 }
 0x33d   :  { %v3024_v20 = vpop.f32.mrf.mxu0 }
 0x33e   :  { %v3059_v12 = vpop.f32.mrf.mxu1  ;;  %v3025_v48 = vadd.f32 %v3024_v20, %v3023_v44 }
 0x33f   :  { %v3060_v51 = vadd.f32 %v3059_v12, %v3058_v5 }
 0x340   :  { %v2031_v49 = vadd.f32 %v3025_v48, %v4241_v57 }
 0x342   :  { %v2101_v52 = vadd.f32 %v3060_v51, %v2031_v49 }
 0x344   :  { %2104 = vst [vmem:[#allocation10 + $0x50] sm:$0xff] %v2101_v52 }
 0x35d   :  { %v3093_v53 = vpop.f32.mrf.mxu0 }
 0x35e   :  { %v3128_v54 = vpop.f32.mrf.mxu1 }
 0x35f   :  { %v3094_v55 = vpop.f32.mrf.mxu0 }
 0x360   :  { %v3129_v22 = vpop.f32.mrf.mxu1  ;;  %v3095_v9 = vadd.f32 %v3094_v55, %v3093_v53 }
 0x361   :  { %v3130_v19 = vadd.f32 %v3129_v22, %v3128_v54 }
 0x362   :  { %v2186_v11 = vadd.f32 %v3095_v9, %v4241_v57 }
 0x364   :  { %v2256_v8 = vadd.f32 %v3130_v19, %v2186_v11 }
 0x366   :  { %2259 = vst [vmem:[#allocation10 + $0x58] sm:$0xff] %v2256_v8 }
 0x367   :  { %3288 = shalt.err (!%p3285_p10)
}
 0x368   :  { %2271 = dma.vmem_to_hbm [thread:$0]  %s2266_s10, 1536, %s4677_s6, [#allocation4], %s3309_s7, %s3309_s7, %s3310_s8  }
 0x369   :  { %3303 = dma.done.wait [#allocation4], 1536  }
 0x36a   :  { %3304 = vsyncadd [#allocation4], 4294965760 }
 0x36b   :  { %2275 = vsyncpa [#allocation3], 1 }
 0x36c   :  { %2276 = vsyncpa [#allocation8], 1 }
 0x36d   :  { %2277 = vsyncpa [#allocation4], 1 }
 0x36e   :  { %2278 = vsyncpa [#allocation5], 1 }

</bundles_post_ra>
